<compile_context>
chip_gen: v7x
topology: tpu7x:2x2x1
jax: 0.10.0
libtpu: 0.0.40
codegen_flags: <defaults>
</compile_context>

<pallas_src>
import numpy as np

import jax
import jax.numpy as jnp
from jax.experimental import pallas as pl
from jax.experimental.pallas import tpu as pltpu


def sgab_kernel(x_ref, m_ref, w1_ref, s_ref, w2_ref,
                b1_ref, bdw_ref, b2_ref, o_ref):
    Bt, H, L = x_ref.shape
    M = Bt * H
    x = x_ref[...].reshape(M, L)                        # (M, L) f32, lane-dense

    # ---- LayerNorm (channels_first == per-pixel over C) -------------------
    # One stacked f32 matmul for both statistics: [x ; x*x] @ block-diag(1/C).
    stats = jnp.dot(jnp.concatenate([x, x * x], axis=0), m_ref[...],
                    preferred_element_type=jnp.float32)          # (2M, L)
    mean = stats[:M]
    var = stats[M:] - mean * mean
    xn = (x - mean) * jax.lax.rsqrt(var + 1e-6)         # gamma/beta folded into Conv1

    # ---- Conv1: 1x1 conv C -> 2C as ONE fused N=2L bf16 matmul -------------
    y = jnp.dot(xn.astype(jnp.bfloat16), w1_ref[...],
                preferred_element_type=jnp.float32) + b1_ref[...]  # (M, 2L)
    a = y[:, :L]                                        # lane-aligned split (free)
    z = y[:, L:]

    # ---- Depthwise 7x7 conv on `a` (padding 3) -----------------------------
    # Vertical taps: 7 in-register row-shifted views (per image in the batch
    # tile, zero rows at the top/bottom borders).  Horizontal taps and the
    # per-channel weights are folded into one banded (7L, L) bf16 matrix, so
    # the whole conv is a single K=7L matmul with f32 accumulation.
    a3 = a.reshape(Bt, H, L)
    shifted = []
    for ky in range(7):                                 # short static unroll
        dy = ky - 3                                     # source row = out row + dy
        if dy == 0:
            sh = a3
        elif dy > 0:
            sh = jnp.concatenate(
                [a3[:, dy:, :], jnp.zeros((Bt, dy, L), a3.dtype)], axis=1)
        else:
            sh = jnp.concatenate(
                [jnp.zeros((Bt, -dy, L), a3.dtype), a3[:, :H + dy, :]], axis=1)
        shifted.append(sh.reshape(M, L))
    lhs = jnp.concatenate(shifted, axis=1).astype(jnp.bfloat16)    # (M, 7L)
    dwa = jnp.dot(lhs, s_ref[...],
                  preferred_element_type=jnp.float32) + bdw_ref[...]

    # ---- gate, Conv2 (1x1 C->C, `scale` folded in), residual ---------------
    g = (z * dwa).astype(jnp.bfloat16)
    out = jnp.dot(g, w2_ref[...],
                  preferred_element_type=jnp.float32) + b2_ref[...]
    o_ref[...] = (out + x).reshape(Bt, H, L)            # lane-dense store


def _build_lane_dense_params(params, W, C):
    """Precompute lane-dense block-diagonal / banded operands on the host."""
    gamma, beta, w1, b1, dw, bdw, w2, b2, scale = params
    L = W * C
    f32 = jnp.float32

    def blockdiag(mat_cc):
        # (C, C) -> (L, L): W copies on the diagonal; lane index = w*C + c.
        return jnp.einsum('uv,ij->uivj', jnp.eye(W, dtype=f32),
                          mat_cc.astype(f32)).reshape(L, L)

    def tile_vec(v_c):
        # per-channel (C,) -> (1, L) repeated over W (lane index = w*C + c).
        return jnp.tile(v_c.reshape(-1).astype(f32), W).reshape(1, L)

    # LayerNorm averaging matrix (kept f32 for accuracy).
    m_mean = blockdiag(jnp.full((C, C), 1.0 / C, f32))

    # Conv1 fused (a | z) with gamma/beta folded in:
    #   (gamma*xn + beta) @ W1 + b1 == xn @ (diag(gamma) W1) + (beta @ W1 + b1)
    w1_full = jnp.concatenate([blockdiag(w1[:, :C]), blockdiag(w1[:, C:])],
                              axis=1)                              # (L, 2L) f32
    gamma_t = tile_vec(gamma[0])
    beta_t = tile_vec(beta[0])
    b1_full = jnp.concatenate([tile_vec(b1[0, :C]), tile_vec(b1[0, C:])], axis=1)
    w1_big = (gamma_t.reshape(L, 1) * w1_full).astype(jnp.bfloat16)
    b1_fold = beta_t @ w1_full + b1_full                           # (1, 2L) f32

    # Banded matrix for the 7x7 depthwise conv, reshaped to a single (7L, L):
    #   S[ky*L + win*C + c, wout*C + c] = dw[ky*7 + kx, c],  kx = win - wout + 3
    dw_np = np.asarray(dw, np.float32)
    s_np = np.zeros((7, L, L), np.float32)
    for ky in range(7):
        for wout in range(W):
            for kx in range(7):
                win = wout + kx - 3
                if 0 <= win < W:
                    for c in range(C):
                        s_np[ky, win * C + c, wout * C + c] = dw_np[ky * 7 + kx, c]
    s_band = jnp.asarray(s_np.reshape(7 * L, L)).astype(jnp.bfloat16)
    bdw_t = tile_vec(bdw[0])

    # Conv2 with `scale` folded into its columns and bias.
    scale_t = tile_vec(scale[0])
    w2_big = (blockdiag(w2) * scale_t).astype(jnp.bfloat16)
    b2_fold = tile_vec(b2[0]) * scale_t

    return (m_mean, w1_big, s_band, w2_big, b1_fold, bdw_t, b2_fold)


def _pick_bt(B, H):
    """Largest batch tile with Bt*H <= 256 that still leaves >= 2 grid steps."""
    best = 1
    for cand in range(1, B + 1):
        if B % cand:
            continue
        if cand * H > 256:
            continue
        if B // cand < 2 and B > 1:
            continue
        best = cand
    return best


def sgab_pallas(x_nhwc, params, bt=None):
    B, H, W, C = x_nhwc.shape
    L = W * C
    if L % 128 != 0:
        raise ValueError("lane-dense layout requires W*C to be a multiple of 128")
    if bt is None:
        bt = _pick_bt(B, H)
    assert B % bt == 0

    lane_params = _build_lane_dense_params(params, W, C)
    x2d = x_nhwc.reshape(B, H, L)                       # fold W*C onto lanes

    def const_spec(arr):
        zeros = (0,) * arr.ndim
        return pl.BlockSpec(arr.shape, lambda b: zeros)

    out2d = pl.pallas_call(
        sgab_kernel,
        out_shape=jax.ShapeDtypeStruct((B, H, L), jnp.float32),
        grid_spec=pltpu.PrefetchScalarGridSpec(
            num_scalar_prefetch=0,
            grid=(B // bt,),
            in_specs=[pl.BlockSpec((bt, H, L), lambda b: (b, 0, 0))] +
                     [const_spec(p) for p in lane_params],
            out_specs=pl.BlockSpec((bt, H, L), lambda b: (b, 0, 0)),
        ),
        compiler_params=pltpu.CompilerParams(
            dimension_semantics=("parallel",)),
    )(x2d, *lane_params)
    return out2d.reshape(B, H, W, C)


def sgab_reference(x_nhwc, params):
    """Pure-JAX reference (same math, plain jnp, layout-independent)."""
    gamma, beta, w1, b1, dw, bdw, w2, b2, scale = params
    B, H, W, C = x_nhwc.shape
    u = x_nhwc.mean(-1, keepdims=True)
    s = ((x_nhwc - u) ** 2).mean(-1, keepdims=True)
    xn = (x_nhwc - u) / jnp.sqrt(s + 1e-6)
    xn = xn * gamma[0] + beta[0]
    y = xn.reshape(B, H * W, C) @ w1 + b1[0]
    a = y[..., :C].reshape(B, H, W, C)
    z = y[..., C:].reshape(B, H, W, C)
    ap = jnp.pad(a, ((0, 0), (3, 3), (3, 3), (0, 0)))
    dwa = jnp.zeros_like(a)
    for ky in range(7):
        for kx in range(7):
            dwa = dwa + ap[:, ky:ky + H, kx:kx + W, :] * dw[ky * 7 + kx]
    dwa = dwa + bdw[0]
    z = z * dwa
    out = z.reshape(B, H * W, C) @ w2 + b2[0]
    return out.reshape(B, H, W, C) * scale[0] + x_nhwc


def init_params(key, n_feats):
    """Deterministic synthetic init (shapes follow SGAB.__init__).
    Note: PyTorch inits `scale` to zeros; we use small random values so the
    kernel path is actually exercised (still fully deterministic)."""
    C, i_feats = n_feats, 2 * n_feats
    ks = jax.random.split(key, 9)
    f32 = jnp.float32
    gamma = jnp.ones((1, C), f32)                                  # LayerNorm.weight
    beta = jnp.zeros((1, C), f32)                                  # LayerNorm.bias
    w1 = 0.1 * jax.random.normal(ks[0], (C, i_feats), f32)         # Conv1 weight (C -> 2C matrix)
    b1 = 0.1 * jax.random.normal(ks[1], (1, i_feats), f32)         # Conv1 bias
    dw = 0.1 * jax.random.normal(ks[2], (49, C), f32)              # DWConv1 weight (7*7, C)
    bdw = 0.1 * jax.random.normal(ks[3], (1, C), f32)              # DWConv1 bias
    w2 = 0.1 * jax.random.normal(ks[4], (C, C), f32)               # Conv2 weight (C -> C matrix)
    b2 = 0.1 * jax.random.normal(ks[5], (1, C), f32)               # Conv2 bias
    scale = 0.1 * jax.random.normal(ks[6], (1, C), f32)            # self.scale
    return (gamma, beta, w1, b1, dw, bdw, w2, b2, scale)


if __name__ == "__main__":
    key = jax.random.PRNGKey(0)
    # NCHW as in the PyTorch module; W*C = 128 (lane-dense), B=16 so the batch
    # tile gives M = Bt*H = 128 matmul rows while keeping >= 2 grid steps.
    B, C, H, W = 16, 8, 16, 16
    kx_, kp = jax.random.split(key)
    x_nchw = jax.random.normal(kx_, (B, C, H, W), jnp.float32)
    params = init_params(kp, C)

    x_nhwc = jnp.transpose(x_nchw, (0, 2, 3, 1))  # -> NHWC for the kernel
    out_nhwc = jax.block_until_ready(sgab_pallas(x_nhwc, params))
    assert out_nhwc.shape == (B, H, W, C)

    ref_nhwc = sgab_reference(x_nhwc, params)
    err = float(jnp.max(jnp.abs(out_nhwc - ref_nhwc)))
    # Tolerance accounts for bf16 MXU operands (f32 accumulate) on Conv1,
    # the depthwise matmul and Conv2; LN statistics stay f32.
    assert jnp.allclose(out_nhwc, ref_nhwc, atol=2e-3, rtol=2e-3), f"max err {err}"
    print("KERNEL_OK")
</pallas_src>

<mosaic_0001>
module attributes {stable_mosaic.version = 11 : i64} {
  func.func @sgab_kernel(%arg0: i32, %arg1: memref<8x16x128xf32, #tpu.memory_space<vmem>>, %arg2: memref<128x128xf32, #tpu.memory_space<vmem>>, %arg3: memref<128x256xbf16, #tpu.memory_space<vmem>>, %arg4: memref<896x128xbf16, #tpu.memory_space<vmem>>, %arg5: memref<128x128xbf16, #tpu.memory_space<vmem>>, %arg6: memref<1x256xf32, #tpu.memory_space<vmem>>, %arg7: memref<1x128xf32, #tpu.memory_space<vmem>>, %arg8: memref<1x128xf32, #tpu.memory_space<vmem>>, %arg9: memref<8x16x128xf32, #tpu.memory_space<vmem>>) attributes {dimension_semantics = [#tpu.dimension_semantics<parallel>], iteration_bounds = array<i64: 2>, scalar_prefetch = 0 : i64, scratch_operands = 0 : i64, tpu.core_type = #tpu.core_type<tc>, window_params = [{transform_indices = @transform_0, window_bounds = array<i64: 8, 16, 128>}, {pipeline_mode = #tpu.pipeline_mode<synchronous>, transform_indices = @transform_1, window_bounds = array<i64: 128, 128>}, {pipeline_mode = #tpu.pipeline_mode<synchronous>, transform_indices = @transform_2, window_bounds = array<i64: 128, 256>}, {pipeline_mode = #tpu.pipeline_mode<synchronous>, transform_indices = @transform_3, window_bounds = array<i64: 896, 128>}, {pipeline_mode = #tpu.pipeline_mode<synchronous>, transform_indices = @transform_4, window_bounds = array<i64: 128, 128>}, {pipeline_mode = #tpu.pipeline_mode<synchronous>, transform_indices = @transform_5, window_bounds = array<i64: 1, 256>}, {pipeline_mode = #tpu.pipeline_mode<synchronous>, transform_indices = @transform_6, window_bounds = array<i64: 1, 128>}, {pipeline_mode = #tpu.pipeline_mode<synchronous>, transform_indices = @transform_7, window_bounds = array<i64: 1, 128>}, {transform_indices = @transform_8, window_bounds = array<i64: 8, 16, 128>}]} {
    %c0 = arith.constant 0 : index
    %c0_0 = arith.constant 0 : index
    %c0_1 = arith.constant 0 : index
    %0 = vector.load %arg1[%c0, %c0_0, %c0_1] : memref<8x16x128xf32, #tpu.memory_space<vmem>>, vector<8x16x128xf32>
    %1 = vector.shape_cast %0 : vector<8x16x128xf32> to vector<128x128xf32>
    %2 = arith.mulf %1, %1 : vector<128x128xf32>
    %3 = tpu.concatenate %1, %2 in 0 : vector<128x128xf32>, vector<128x128xf32> -> vector<256x128xf32>
    %c0_2 = arith.constant 0 : index
    %c0_3 = arith.constant 0 : index
    %4 = vector.load %arg2[%c0_2, %c0_3] : memref<128x128xf32, #tpu.memory_space<vmem>>, vector<128x128xf32>
    %cst = arith.constant dense<0.000000e+00> : vector<256x128xf32>
    %5 = tpu.matmul %3, %4, %cst {dimension_numbers = #tpu.dot_dimension_numbers<[1], [0], [0], [1], [0, 0, 1, 1], [], []>} : vector<256x128xf32>, vector<128x128xf32>, vector<256x128xf32> -> vector<256x128xf32>
    %6 = vector.extract_strided_slice %5 {offsets = [0, 0], sizes = [128, 128], strides = [1, 1]} : vector<256x128xf32> to vector<128x128xf32>
    %7 = vector.extract_strided_slice %5 {offsets = [128, 0], sizes = [128, 128], strides = [1, 1]} : vector<256x128xf32> to vector<128x128xf32>
    %8 = arith.mulf %6, %6 : vector<128x128xf32>
    %9 = arith.subf %7, %8 : vector<128x128xf32>
    %10 = arith.subf %1, %6 : vector<128x128xf32>
    %cst_4 = arith.constant 9.99999997E-7 : f32
    %11 = vector.broadcast %cst_4 : f32 to vector<128x128xf32>
    %12 = arith.addf %9, %11 : vector<128x128xf32>
    %13 = math.rsqrt %12 : vector<128x128xf32>
    %14 = arith.mulf %10, %13 : vector<128x128xf32>
    %15 = arith.truncf %14 : vector<128x128xf32> to vector<128x128xbf16>
    %c0_5 = arith.constant 0 : index
    %c0_6 = arith.constant 0 : index
    %16 = vector.load %arg3[%c0_5, %c0_6] : memref<128x256xbf16, #tpu.memory_space<vmem>>, vector<128x256xbf16>
    %cst_7 = arith.constant dense<0.000000e+00> : vector<128x256xf32>
    %17 = tpu.matmul %15, %16, %cst_7 {dimension_numbers = #tpu.dot_dimension_numbers<[1], [0], [0], [1], [0, 0, 1, 1], [], []>} : vector<128x128xbf16>, vector<128x256xbf16>, vector<128x256xf32> -> vector<128x256xf32>
    %c0_8 = arith.constant 0 : index
    %c0_9 = arith.constant 0 : index
    %18 = vector.load %arg6[%c0_8, %c0_9] : memref<1x256xf32, #tpu.memory_space<vmem>>, vector<1x256xf32>
    %19 = vector.broadcast %18 : vector<1x256xf32> to vector<128x256xf32>
    %20 = arith.addf %17, %19 : vector<128x256xf32>
    %21 = vector.extract_strided_slice %20 {offsets = [0, 0], sizes = [128, 128], strides = [1, 1]} : vector<128x256xf32> to vector<128x128xf32>
    %22 = vector.extract_strided_slice %20 {offsets = [0, 128], sizes = [128, 128], strides = [1, 1]} : vector<128x256xf32> to vector<128x128xf32>
    %23 = vector.shape_cast %21 : vector<128x128xf32> to vector<8x16x128xf32>
    %cst_10 = arith.constant 0.000000e+00 : f32
    %24 = vector.broadcast %cst_10 : f32 to vector<8x3x128xf32>
    %25 = vector.extract_strided_slice %23 {offsets = [0, 0, 0], sizes = [8, 13, 128], strides = [1, 1, 1]} : vector<8x16x128xf32> to vector<8x13x128xf32>
    %26 = tpu.concatenate %24, %25 in 1 : vector<8x3x128xf32>, vector<8x13x128xf32> -> vector<8x16x128xf32>
    %27 = vector.shape_cast %26 : vector<8x16x128xf32> to vector<128x128xf32>
    %cst_11 = arith.constant 0.000000e+00 : f32
    %28 = vector.broadcast %cst_11 : f32 to vector<8x2x128xf32>
    %29 = vector.extract_strided_slice %23 {offsets = [0, 0, 0], sizes = [8, 14, 128], strides = [1, 1, 1]} : vector<8x16x128xf32> to vector<8x14x128xf32>
    %30 = tpu.concatenate %28, %29 in 1 : vector<8x2x128xf32>, vector<8x14x128xf32> -> vector<8x16x128xf32>
    %31 = vector.shape_cast %30 : vector<8x16x128xf32> to vector<128x128xf32>
    %cst_12 = arith.constant 0.000000e+00 : f32
    %32 = vector.broadcast %cst_12 : f32 to vector<8x1x128xf32>
    %33 = vector.extract_strided_slice %23 {offsets = [0, 0, 0], sizes = [8, 15, 128], strides = [1, 1, 1]} : vector<8x16x128xf32> to vector<8x15x128xf32>
    %34 = tpu.concatenate %32, %33 in 1 : vector<8x1x128xf32>, vector<8x15x128xf32> -> vector<8x16x128xf32>
    %35 = vector.shape_cast %34 : vector<8x16x128xf32> to vector<128x128xf32>
    %36 = vector.shape_cast %23 : vector<8x16x128xf32> to vector<128x128xf32>
    %37 = vector.extract_strided_slice %23 {offsets = [0, 1, 0], sizes = [8, 15, 128], strides = [1, 1, 1]} : vector<8x16x128xf32> to vector<8x15x128xf32>
    %cst_13 = arith.constant 0.000000e+00 : f32
    %38 = vector.broadcast %cst_13 : f32 to vector<8x1x128xf32>
    %39 = tpu.concatenate %37, %38 in 1 : vector<8x15x128xf32>, vector<8x1x128xf32> -> vector<8x16x128xf32>
    %40 = vector.shape_cast %39 : vector<8x16x128xf32> to vector<128x128xf32>
    %41 = vector.extract_strided_slice %23 {offsets = [0, 2, 0], sizes = [8, 14, 128], strides = [1, 1, 1]} : vector<8x16x128xf32> to vector<8x14x128xf32>
    %cst_14 = arith.constant 0.000000e+00 : f32
    %42 = vector.broadcast %cst_14 : f32 to vector<8x2x128xf32>
    %43 = tpu.concatenate %41, %42 in 1 : vector<8x14x128xf32>, vector<8x2x128xf32> -> vector<8x16x128xf32>
    %44 = vector.shape_cast %43 : vector<8x16x128xf32> to vector<128x128xf32>
    %45 = vector.extract_strided_slice %23 {offsets = [0, 3, 0], sizes = [8, 13, 128], strides = [1, 1, 1]} : vector<8x16x128xf32> to vector<8x13x128xf32>
    %cst_15 = arith.constant 0.000000e+00 : f32
    %46 = vector.broadcast %cst_15 : f32 to vector<8x3x128xf32>
    %47 = tpu.concatenate %45, %46 in 1 : vector<8x13x128xf32>, vector<8x3x128xf32> -> vector<8x16x128xf32>
    %48 = vector.shape_cast %47 : vector<8x16x128xf32> to vector<128x128xf32>
    %49 = tpu.concatenate %27, %31, %35, %36, %40, %44, %48 in 1 : vector<128x128xf32>, vector<128x128xf32>, vector<128x128xf32>, vector<128x128xf32>, vector<128x128xf32>, vector<128x128xf32>, vector<128x128xf32> -> vector<128x896xf32>
    %50 = arith.truncf %49 : vector<128x896xf32> to vector<128x896xbf16>
    %c0_16 = arith.constant 0 : index
    %c0_17 = arith.constant 0 : index
    %51 = vector.load %arg4[%c0_16, %c0_17] : memref<896x128xbf16, #tpu.memory_space<vmem>>, vector<896x128xbf16>
    %cst_18 = arith.constant dense<0.000000e+00> : vector<128x128xf32>
    %52 = tpu.matmul %50, %51, %cst_18 {dimension_numbers = #tpu.dot_dimension_numbers<[1], [0], [0], [1], [0, 0, 1, 1], [], []>} : vector<128x896xbf16>, vector<896x128xbf16>, vector<128x128xf32> -> vector<128x128xf32>
    %c0_19 = arith.constant 0 : index
    %c0_20 = arith.constant 0 : index
    %53 = vector.load %arg7[%c0_19, %c0_20] : memref<1x128xf32, #tpu.memory_space<vmem>>, vector<1x128xf32>
    %54 = vector.broadcast %53 : vector<1x128xf32> to vector<128x128xf32>
    %55 = arith.addf %52, %54 : vector<128x128xf32>
    %56 = arith.mulf %22, %55 : vector<128x128xf32>
    %57 = arith.truncf %56 : vector<128x128xf32> to vector<128x128xbf16>
    %c0_21 = arith.constant 0 : index
    %c0_22 = arith.constant 0 : index
    %58 = vector.load %arg5[%c0_21, %c0_22] : memref<128x128xbf16, #tpu.memory_space<vmem>>, vector<128x128xbf16>
    %cst_23 = arith.constant dense<0.000000e+00> : vector<128x128xf32>
    %59 = tpu.matmul %57, %58, %cst_23 {dimension_numbers = #tpu.dot_dimension_numbers<[1], [0], [0], [1], [0, 0, 1, 1], [], []>} : vector<128x128xbf16>, vector<128x128xbf16>, vector<128x128xf32> -> vector<128x128xf32>
    %c0_24 = arith.constant 0 : index
    %c0_25 = arith.constant 0 : index
    %60 = vector.load %arg8[%c0_24, %c0_25] : memref<1x128xf32, #tpu.memory_space<vmem>>, vector<1x128xf32>
    %61 = vector.broadcast %60 : vector<1x128xf32> to vector<128x128xf32>
    %62 = arith.addf %59, %61 : vector<128x128xf32>
    %63 = arith.addf %62, %1 : vector<128x128xf32>
    %64 = vector.shape_cast %63 : vector<128x128xf32> to vector<8x16x128xf32>
    %c0_26 = arith.constant 0 : index
    %c0_27 = arith.constant 0 : index
    %c0_28 = arith.constant 0 : index
    %65 = vector.load %arg9[%c0_26, %c0_27, %c0_28] : memref<8x16x128xf32, #tpu.memory_space<vmem>>, vector<8x16x128xf32>
    tpu.vector_store %arg9[%c0_26, %c0_27, %c0_28], %64 {strides = array<i32>} : memref<8x16x128xf32, #tpu.memory_space<vmem>>, vector<8x16x128xf32>,
    return
  }
  func.func @transform_0(%arg0: i32) -> (i32, i32, i32) {
    %c0_i32 = arith.constant 0 : i32
    %c0_i32_0 = arith.constant 0 : i32
    %c0_i32_1 = arith.constant 0 : i32
    return %arg0, %c0_i32, %c0_i32_0 : i32, i32, i32
  }
  func.func @transform_1(%arg0: i32) -> (i32, i32) {
    %c0_i32 = arith.constant 0 : i32
    %c0_i32_0 = arith.constant 0 : i32
    %c0_i32_1 = arith.constant 0 : i32
    return %c0_i32, %c0_i32_0 : i32, i32
  }
  func.func @transform_2(%arg0: i32) -> (i32, i32) {
    %c0_i32 = arith.constant 0 : i32
    %c0_i32_0 = arith.constant 0 : i32
    %c0_i32_1 = arith.constant 0 : i32
    return %c0_i32, %c0_i32_0 : i32, i32
  }
  func.func @transform_3(%arg0: i32) -> (i32, i32) {
    %c0_i32 = arith.constant 0 : i32
    %c0_i32_0 = arith.constant 0 : i32
    %c0_i32_1 = arith.constant 0 : i32
    return %c0_i32, %c0_i32_0 : i32, i32
  }
  func.func @transform_4(%arg0: i32) -> (i32, i32) {
    %c0_i32 = arith.constant 0 : i32
    %c0_i32_0 = arith.constant 0 : i32
    %c0_i32_1 = arith.constant 0 : i32
    return %c0_i32, %c0_i32_0 : i32, i32
  }
  func.func @transform_5(%arg0: i32) -> (i32, i32) {
    %c0_i32 = arith.constant 0 : i32
    %c0_i32_0 = arith.constant 0 : i32
    %c0_i32_1 = arith.constant 0 : i32
    return %c0_i32, %c0_i32_0 : i32, i32
  }
  func.func @transform_6(%arg0: i32) -> (i32, i32) {
    %c0_i32 = arith.constant 0 : i32
    %c0_i32_0 = arith.constant 0 : i32
    %c0_i32_1 = arith.constant 0 : i32
    return %c0_i32, %c0_i32_0 : i32, i32
  }
  func.func @transform_7(%arg0: i32) -> (i32, i32) {
    %c0_i32 = arith.constant 0 : i32
    %c0_i32_0 = arith.constant 0 : i32
    %c0_i32_1 = arith.constant 0 : i32
    return %c0_i32, %c0_i32_0 : i32, i32
  }
  func.func @transform_8(%arg0: i32) -> (i32, i32, i32) {
    %c0_i32 = arith.constant 0 : i32
    %c0_i32_0 = arith.constant 0 : i32
    %c0_i32_1 = arith.constant 0 : i32
    return %arg0, %c0_i32, %c0_i32_0 : i32, i32, i32
  }
}

</mosaic_0001>

<bundles_post_ra>
// kernel: tpu_custom_call.1
= control target key start
LH: loop header
LB: loop body
LE: loop exit
PB: predicated region body
PF: predicated region fallthrough
CT: control target
= control target key end

     0   :  { %s4761_s0 = inlined_call_operand.hbm [shape: f32[16,16,128], index: 0, kind: input, shape index: {}]   ;;  %s4762_s1 = inlined_call_operand.hbm [shape: f32[128,128], index: 1, kind: input, shape index: {}]   ;;  %s4763_s2 = inlined_call_operand.hbm [shape: bf16[128,256], index: 2, kind: input, shape index: {}]   ;;  %s4764_s3 = inlined_call_operand.hbm [shape: bf16[896,128], index: 3, kind: input, shape index: {}]   ;;  %s4765_s4 = inlined_call_operand.hbm [shape: bf16[128,128], index: 4, kind: input, shape index: {}]   ;;  %s4766_s5 = inlined_call_operand.vmem [shape: f32[1,256], index: 5, kind: input, shape index: {}]   ;;  %s4767_s6 = inlined_call_operand.vmem [shape: f32[1,128], index: 6, kind: input, shape index: {}]   ;;  %s4768_s7 = inlined_call_operand.vmem [shape: f32[1,128], index: 7, kind: input, shape index: {}]   ;;  %s4769_s8 = inlined_call_operand.hbm [shape: f32[16,16,128], index: 8, kind: output, shape index: {}]  }
   0x1   :  { %4779 = sst [smem:[#allocation17_spill]] %s4762_s1 }
   0x2   :  { %13 = vsyncpa [#allocation3], 0 }
   0x3   :  { %15 = vsyncpa [#allocation3 + $0x1], 0 }
   0x4   :  { %16 = vsyncpa [#allocation6], 0 }
   0x5   :  { %17 = vsyncpa [#allocation9], 0 }
   0x6   :  { %18 = vsyncpa [#allocation4], 0 }
   0x7   :  { %20 = vsyncpa [#allocation4 + $0x1], 0  ;;  %s3778_s27 = smov 0   ;;  %s3780_s28 = smov 0  }
   0x8   :  { %s3782_s29 = smov 0   ;;  %s3784_s30 = smov 0  }
   0x9 LB: > { %s3799_s9 = sadd.s32 4294967295, %s3717_s30   ;;  %s2543_s10 = sadd.s32 4294967294, %s3717_s30   ;;  %s3717_s30 = sphi %s3784_s30, %s4821_s30   ;;  %s3713_s29 = sphi %s3782_s29, %s4820_s29   ;;  %s3709_s28 = sphi %s3780_s28, %s4819_s28   ;;  %s3705_s27 = sphi %s3778_s27, %s4818_s27  }
   0xa   : > { %p46_p0 = scmp.ne.s32.totalorder %s3709_s28, %s3705_s27  ;;  %p4770_p1 = scmp.eq.s32.totalorder %s3799_s9, 0 }
   0xb   : > { %p223_p3 = scmp.eq.s32.totalorder %s2543_s10, 1  ;;  %p2544_p5 = scmp.ge.s32.totalorder %s3717_s30, 1 }
   0xc   : > { %p3808_p4 = por %p4770_p1, %p46_p0  ;;  %p230_p7 = scmp.lt.s32.totalorder %s3717_s30, 3 }
   0xd   : > { %p3813_p6 = por %p223_p3, %p46_p0  ;;  %s3719_s14 = smov [#allocation5]  }
   0xe   : > { %s4780_s11 = scalar_select %p3808_p4, 1, 0 }
   0xf   : > { %s4781_s12 = scalar_select %p3813_p6, 1, 0 }
  0x10   : > { %p3818_p8 = pnand %p2544_p5, %p230_p7  ;;  %s242_s15 = sshll.u32 %s3719_s14, 4  ;;  %s3822_s15 = int_to_ptr.vmem [resolvable:$true] %s242_s15 }
  0x11   : > { %4782 = sst [smem:[#allocation16_spill]] %s4781_s12  ;;  %s3720_s17 = smov [#allocation8]  }
  0x12   : > { %s4783_s13 = scalar_select %p3818_p8, 1, 0 }
  0x13   : > { %p3289_p9 = pneg %p3818_p8  ;;  %s268_s18 = sshll.u32 %s3720_s17, 4  ;;  %s3833_s18 = int_to_ptr.vmem [resolvable:$true] %s268_s18 }
  0x14   : > { %s4785_s1 = sld [smem:[#allocation17_spill]] }
  0x15   : > { %p3829_p11 = pnand %p3289_p9, %p4770_p1 }
  0x17   : > { %p3843_p13 = pneg %p3829_p11 }
  0x1a   : > { %s3501_s21 = scalar_lea.hbm %s4785_s1, 2048 }
  0x1b   : > { %p3502_p12 = scmp.ne.s32.totalorder %s4785_s1, %s3501_s21  ;;  %p3508_p5 = scmp.lt.u32.totalorder %s3501_s21, %s4785_s1 }
  0x1d   : > { %p3504_p0 = pnand %p3843_p13, %p3502_p12 }
  0x1f   : > { %p3505_p3 = pneg %p3504_p0 }
  0x21   : > { %p3510_p7 = pnand %p3508_p5, %p3505_p3 }
  0x23   : > { %3513 = shalt.err (!%p3510_p7)
}
  0x24   : > { %s3514_s10 = scalar_lea.vmem %s3822_s15, 2048  ;;  %p3522_p2 = scmp.lt.s32.totalorder %s3822_s15, %s3822_s15 }
  0x25   : > { %p3515_p9 = scmp.ne.s32.totalorder %s3822_s15, %s3514_s10  ;;  %p3523_p6 = scmp.lt.s32.totalorder %s3514_s10, %s3514_s10 }
  0x27   : > { %p3517_p10 = pnand %p3515_p9, %p3843_p13  ;;  %p3524_p12 = por %p3523_p6, %p3522_p2 }
  0x29   : > { %p3518_p1 = pneg %p3517_p10 }
  0x2b   : > { %p3525_p0 = pnand %p3524_p12, %p3518_p1 }
  0x2d   : > { %3528 = shalt.err (!%p3525_p0)
}
  0x2e   : > { %s4772_s14 = smov 128   ;;  %s4774_s17 = smov 8  }
  0x2f   : > { %3292 = dma.hbm_to_vmem [thread:$0]  (!%p3829_p11), %s4785_s1, 2048, %s3822_s15, [#allocation6], %s4772_s14, %s4772_s14, %s4774_s17  }
  0x30   : > { %s3529_s23 = scalar_lea.hbm %s4764_s3, 7168 }
  0x31   : > { %p3530_p1 = scmp.ne.s32.totalorder %s4764_s3, %s3529_s23  ;;  %p3536_p10 = scmp.lt.u32.totalorder %s3529_s23, %s4764_s3 }
  0x33   : > { %p3532_p2 = pnand %p3530_p1, %p3843_p13 }
  0x35   : > { %p3533_p6 = pneg %p3532_p2 }
  0x37   : > { %p3538_p3 = pnand %p3536_p10, %p3533_p6 }
  0x39   : > { %3541 = shalt.err (!%p3538_p3)
}
  0x3a   : > { %s3542_s15 = scalar_lea.vmem %s3833_s18, 7168  ;;  %p3550_p12 = scmp.lt.s32.totalorder %s3833_s18, %s3833_s18 }
  0x3b   : > { %p3543_p5 = scmp.ne.s32.totalorder %s3833_s18, %s3542_s15  ;;  %p3551_p0 = scmp.lt.s32.totalorder %s3542_s15, %s3542_s15 }
  0x3d   : > { %p3545_p7 = pnand %p3543_p5, %p3843_p13  ;;  %p3552_p1 = por %p3551_p0, %p3550_p12 }
  0x3f   : > { %p3546_p9 = pneg %p3545_p7 }
  0x41   : > { %p3553_p2 = pnand %p3552_p1, %p3546_p9 }
  0x43   : > { %3556 = shalt.err (!%p3553_p2)
}
  0x44   : > { %s4778_s19 = smov 64   ;;  %s3724_s12 = smov 4  }
  0x45   : > { %3298 = dma.hbm_to_vmem [thread:$0]  (!%p3829_p11), %s4764_s3, 7168, %s3833_s18, [#allocation9], %s4778_s19, %s4778_s19, %s3724_s12  }
  0x46   : > { %s3725_s22 = smov [#allocation7]   ;;  %s3726_s25 = smov [#allocation10]  }
  0x47   : > { %s255_s23 = sshll.u32 %s3725_s22, 4  ;;  %s281_s26 = sshll.u32 %s3726_s25, 4  ;;  %s256_s23 = int_to_ptr.vmem [resolvable:$true] %s255_s23  ;;  %s3893_s26 = int_to_ptr.vmem [resolvable:$true] %s281_s26 }
  0x48   : > { %s3557_s14 = scalar_lea.hbm %s4763_s2, 2048 }
  0x49   : > { %p3558_p6 = scmp.ne.s32.totalorder %s4763_s2, %s3557_s14  ;;  %p3564_p5 = scmp.lt.u32.totalorder %s3557_s14, %s4763_s2 }
  0x4b   : > { %p3560_p10 = pnand %p3558_p6, %p3843_p13 }
  0x4d   : > { %p3561_p3 = pneg %p3560_p10 }
  0x4f   : > { %p3566_p7 = pnand %p3564_p5, %p3561_p3 }
  0x51   : > { %3569 = shalt.err (!%p3566_p7)
}
  0x52   : > { %s3570_s21 = scalar_lea.vmem %s256_s23, 2048  ;;  %p3578_p1 = scmp.lt.s32.totalorder %s256_s23, %s256_s23 }
  0x53   : > { %p3571_p9 = scmp.ne.s32.totalorder %s256_s23, %s3570_s21  ;;  %p3579_p2 = scmp.lt.s32.totalorder %s3570_s21, %s3570_s21 }
  0x55   : > { %p3573_p12 = pnand %p3571_p9, %p3843_p13  ;;  %p3580_p4 = por %p3579_p2, %p3578_p1 }
  0x57   : > { %p3574_p0 = pneg %p3573_p12 }
  0x59   : > { %p3581_p8 = pnand %p3580_p4, %p3574_p0 }
  0x5b   : > { %3584 = shalt.err (!%p3581_p8)
}
  0x5c   : > { %s4787_s1 = smov 8   ;;  %s4788_s17 = smov 128  }
  0x5d   : > { %3295 = dma.hbm_to_vmem [thread:$0]  (!%p3829_p11), %s4763_s2, 2048, %s256_s23, [#allocation6], %s4788_s17, %s4788_s17, %s4787_s1  }
  0x5e   : > { %s3585_s15 = scalar_lea.hbm %s4765_s4, 1024 }
  0x5f   : > { %p3586_p6 = scmp.ne.s32.totalorder %s4765_s4, %s3585_s15  ;;  %p3592_p10 = scmp.lt.u32.totalorder %s3585_s15, %s4765_s4 }
  0x61   : > { %p3588_p4 = pnand %p3586_p6, %p3843_p13 }
  0x63   : > { %p3589_p8 = pneg %p3588_p4 }
  0x65   : > { %p3594_p3 = pnand %p3592_p10, %p3589_p8 }
  0x67   : > { %3597 = shalt.err (!%p3594_p3)
}
  0x68   : > { %s3598_s23 = scalar_lea.vmem %s3893_s26, 1024  ;;  %p3606_p12 = scmp.lt.s32.totalorder %s3893_s26, %s3893_s26 }
  0x69   : > { %p3599_p5 = scmp.ne.s32.totalorder %s3893_s26, %s3598_s23  ;;  %p3607_p0 = scmp.lt.s32.totalorder %s3598_s23, %s3598_s23 }
  0x6b   : > { %p3601_p7 = pnand %p3599_p5, %p3843_p13  ;;  %p3608_p1 = por %p3607_p0, %p3606_p12 }
  0x6d   : > { %p3602_p9 = pneg %p3601_p7 }
  0x6f   : > { %p3609_p2 = pnand %p3608_p1, %p3602_p9 }
  0x71   : > { %3612 = shalt.err (!%p3609_p2)
}
  0x72   : > { %s4789_s19 = smov 64   ;;  %s3943_s16 = sadd.s32 1, %s3717_s30  }
  0x73   : > { %3301 = dma.hbm_to_vmem [thread:$0]  (!%p3829_p11), %s4765_s4, 1024, %s3893_s26, [#allocation9], %s4789_s19, %s4789_s19, %s3724_s12  }
  0x74   : > { %s30_s24 = ssub.s32 %s3717_s30, %s3943_s16  ;;  %s33_s25 = sadd.s32 1, %s3713_s29 }
  0x75   : > { %p31_p13 = scmp.eq.s32.totalorder %s30_s24, 0  ;;  %p40_p6 = scmp.ne.s32.totalorder %s3713_s29, %s3709_s28 }
  0x76   : > { %p41_p4 = scmp.eq.s32.totalorder %s3717_s30, 0  ;;  %p4790_p10 = scmp.eq.s32.totalorder %s3799_s9, 1 }
  0x77   : > { %s3952_s10 = scalar_select %p31_p13, %s3713_s29, %s33_s25  }
  0x78   : > { %p42_p8 = por %p41_p4, %p40_p6  ;;  %p3956_p3 = por %p4790_p10, %p40_p6 }
  0x79   : > { %p3314_p5 = scmp.lt.s32.totalorder %s3717_s30, 2  ;;  %s304_s20 = sand.u32 1, %s3713_s29  }
  0x7a   : > { %s2550_s18 = sshll.u32 %s304_s20, 7  ;;  %s2818_s12 = sshll.u32 %s3717_s30, 11 }
  0x7b   : > { %s3966_s23 = scalar_lea.hbm %s4761_s0, %s2818_s12  ;;  %s308_s19 = scalar_lea.vmem [#allocation2], %s2550_s18 }
  0x7c   : > { %s316_s22 = sshll.u32 %s308_s19, 4  ;;  %p3970_p11 = pnand %p3314_p5, %p42_p8  ;;  %s3968_s22 = int_to_ptr.vmem [resolvable:$true] %s316_s22 }
  0x7d   : > { %s3974_s24 = scalar_lea.sflag [#allocation3], %s304_s20  ;;  %s3613_s25 = scalar_lea.hbm %s3966_s23, 2048 }
  0x7e   : > { %p3614_p7 = scmp.ne.s32.totalorder %s3966_s23, %s3613_s25  ;;  %p3615_p9 = pneg %p3970_p11 }
  0x7f   : > { %s3618_s26 = scalar_lea.hbm %s4761_s0, 4096  ;;  %p3619_p1 = scmp.lt.u32.totalorder %s3966_s23, %s4761_s0 }
  0x80   : > { %p3616_p12 = pnand %p3615_p9, %p3614_p7  ;;  %p3620_p2 = scmp.lt.u32.totalorder %s3618_s26, %s3613_s25 }
  0x81   : > { %p3622_p6 = scmp.lt.u32.totalorder %s3613_s25, %s3966_s23 }
  0x82   : > { %p3617_p0 = pneg %p3616_p12  ;;  %p3621_p13 = por %p3620_p2, %p3619_p1 }
  0x84   : > { %p3623_p4 = por %p3622_p6, %p3621_p13 }
  0x86   : > { %p3624_p8 = pnand %p3623_p4, %p3617_p0 }
  0x88   : > { %3627 = shalt.err (!%p3624_p8)
}
  0x89   : > { %s3628_s20 = scalar_lea.vmem %s3968_s22, 2048  ;;  %s3727_s18 = smov [#allocation2]  }
  0x8a   : > { %p3629_p10 = scmp.ne.s32.totalorder %s3968_s22, %s3628_s20  ;;  %s3633_s12 = sshll.u32 %s3727_s18, 4  ;;  %s3634_s12 = int_to_ptr.vmem [resolvable:$false] %s3633_s12 }
  0x8b   : > { %s3635_s21 = scalar_lea.vmem %s3634_s12, 4096  ;;  %p3636_p12 = scmp.lt.s32.totalorder %s3968_s22, %s3634_s12 }
  0x8c   : > { %p3631_p5 = pnand %p3629_p10, %p3615_p9  ;;  %p3637_p1 = scmp.lt.s32.totalorder %s3635_s21, %s3628_s20 }
  0x8e   : > { %p3632_p7 = pneg %p3631_p5  ;;  %p3638_p2 = por %p3637_p1, %p3636_p12 }
  0x90   : > { %p3639_p13 = pnand %p3638_p2, %p3632_p7 }
  0x92   : > { %3642 = shalt.err (!%p3639_p13)
}
  0x93   : > { %3305 = dma.hbm_to_vmem [thread:$0]  (!%p3970_p11), %s3966_s23, 2048, %s3968_s22, %s3974_s24, %s4788_s17, %s4788_s17, %s4787_s1  }
  0x94   : > { %p4793_p9 = scmp.ne.s32.totalorder %s4783_s13, 0 }
  0x95   : > { %s4008_s25 = sand.u32 (!%p4793_p9), 1, %s3709_s28   ;;  %p4794_p0 = scmp.ne.s32.totalorder (!%p4793_p9), %s4780_s11, 0 }
  0x96   : > { %328 = sbr.rel (%p4793_p9) target bundleno = 1265 (0x4f1), region = 52  ;;  %s2555_s26 = sshll.u32 (!%p4793_p9), %s4008_s25, 7 }
  0x97   : > { %s331_s19 = scalar_lea.sflag (!%p4793_p9), [#allocation3], %s4008_s25  ;;  %s4014_s14 = scalar_lea.vmem (!%p4793_p9), [#allocation2], %s2555_s26 }
  0x9d   : > { %3688 = dma.done.wait (%p4794_p0), %s331_s19, 2048  }
  0x9e   : > { %3690 = vsyncadd (%p4794_p0), %s331_s19, 4294965248  ;;  %p4795_p11 = scmp.eq.s32.totalorder %s3799_s9, 0 }
  0xa0   : > { %3692 = dma.done.wait (%p4795_p11), [#allocation6], 4096   ;;  %p4796_p6 = pmov %p4795_p11 }
  0xa2   : > { %3694 = vsyncadd (%p4796_p6), [#allocation6], 4294963200  ;;  %p4797_p4 = pmov %p4796_p6 }
  0xa4   : > { %3696 = dma.done.wait (%p4797_p4), [#allocation9], 8192   ;;  %p4798_p8 = pmov %p4797_p4 }
  0xa5   : > { %v418_v0 = vld [vmem:[#allocation5] sm:$0xff]  ;;  %v419_v1 = vld [vmem:[#allocation5 + $0x8] sm:$0xff]  ;;  %v420_v2 = vld [vmem:[#allocation5 + $0x10] sm:$0xff]  ;;  %vm1049_vm0 = vcmask 1041408   ;;  %vm1098_vm1 = vcmask 1040384   ;;  %vm1000_vm2 = vcmask 1042432  }
  0xa6   : > { %3698 = vsyncadd (%p4798_p8), [#allocation9], 4294959104  ;;  %v3237_v3 = vpack.c.bf16 %v419_v1, %v418_v0  ;;  %v421_v4 = vld [vmem:[#allocation5 + $0x18] sm:$0xff]  ;;  %v422_v6 = vld [vmem:[#allocation5 + $0x20] sm:$0xff]  ;;  %vm1245_vm3 = vcmask 1044480   ;;  %vm1196_vm5 = vcmask 1045504  }
  0xa7   : > { %v3241_v5 = vpack.c.bf16 %v421_v4, %v420_v2  ;;  %v423_v7 = vld [vmem:[#allocation5 + $0x28] sm:$0xff]  ;;  %v4029_v9 = vld [vmem:[%s4014_s14] sm:$0xff]  ;;  %v424_v10 = vld [vmem:[#allocation5 + $0x30] sm:$0xff]  ;;  %vm1147_vm6 = vcmask 1046528   ;;  %vm3729_vm9 = vmmov 1   ;;  %s4666_s18 = scalar_lea.vmem [#allocation11], %s2555_s26 }
  0xa8   : > { %3238 = vmatprep.subr.bf16.mxu0 %v3237_v3  ;;  %v3245_v8 = vpack.c.bf16 %v423_v7, %v422_v6  ;;  %v425_v11 = vld [vmem:[#allocation5 + $0x38] sm:$0xff]  ;;  %3125 = vmatprep.mubr.f32.mxu0 %v4029_v9  ;;  %v426_v13 = vld [vmem:[#allocation5 + $0x40] sm:$0xff]  ;;  %v427_v14 = vld [vmem:[#allocation5 + $0x48] sm:$0xff]  ;;  %v402_v40 = vmul.f32 %v4029_v9, %v4029_v9  ;;  %s2820_s12 = sshll.u32 %s3799_s9, 11  ;;  %s2432_s21 = sshll.u32 %s4666_s18, 4  ;;  %s4713_s21 = int_to_ptr.vmem [resolvable:$true] %s2432_s21 }
  0xa9   : > { %3240 = vmatpush3.bf16.msra.mxu0 %v3237_v3  ;;  %v3249_v12 = vpack.c.bf16 %v425_v11, %v424_v10  ;;  %v428_v15 = vld [vmem:[#allocation5 + $0x50] sm:$0xff]  ;;  %v429_v16 = vld [vmem:[#allocation5 + $0x58] sm:$0xff]  ;;  %v3253_v17 = vpack.c.bf16 %v427_v14, %v426_v13  ;;  %v430_v18 = vld [vmem:[#allocation5 + $0x60] sm:$0xff]  ;;  %s4711_s9 = scalar_lea.hbm %s4769_s8, %s2820_s12  ;;  %s2418_s11 = scalar_lea.sflag [#allocation4], %s4008_s25 }
  0xaa   : > { %3242 = vmatprep.subr.bf16.mxu0 %v3241_v5  ;;  %v431_v19 = vld [vmem:[#allocation5 + $0x68] sm:$0xff]  ;;  %v3257_v20 = vpack.c.bf16 %v429_v16, %v428_v15  ;;  %v432_v21 = vld [vmem:[#allocation5 + $0x70] sm:$0xff]  ;;  %v433_v22 = vld [vmem:[#allocation5 + $0x78] sm:$0xff]  ;;  %s3643_s13 = scalar_lea.vmem %s4713_s21, 2048  ;;  %s3730_s1 = smov [#allocation11]  }
  0xab   : > { %v3261_v23 = vpack.c.bf16 %v431_v19, %v430_v18  ;;  %v3265_v24 = vpack.c.bf16 %v433_v22, %v432_v21  ;;  %v4033_v25 = vld [vmem:[%s4014_s14 + $0x8] sm:$0xff]  ;;  %v4036_v26 = vld [vmem:[%s4014_s14 + $0x10] sm:$0xff]  ;;  %v4039_v27 = vld [vmem:[%s4014_s14 + $0x18] sm:$0xff]  ;;  %p3644_p10 = scmp.ne.s32.totalorder %s4713_s21, %s3643_s13  ;;  %s3647_s17 = sshll.u32 %s3730_s1, 4  ;;  %s3648_s17 = int_to_ptr.vmem [resolvable:$false] %s3647_s17 }
  0xac   : > { %v4043_v28 = vld [vmem:[%s4014_s14 + $0x20] sm:$0xff]  ;;  %v4047_v29 = vld [vmem:[%s4014_s14 + $0x28] sm:$0xff]  ;;  %v4051_v30 = vld [vmem:[%s4014_s14 + $0x30] sm:$0xff]  ;;  %v403_v41 = vmul.f32 %v4033_v25, %v4033_v25  ;;  %v404_v42 = vmul.f32 %v4036_v26, %v4036_v26  ;;  %v405_v43 = vmul.f32 %v4039_v27, %v4039_v27  ;;  %s3649_s23 = scalar_lea.vmem %s3648_s17, 4096  ;;  %p3650_p12 = scmp.lt.s32.totalorder %s4713_s21, %s3648_s17 }
  0xad   : > { %3244 = vmatpush3.bf16.msra.mxu0 %v3241_v5  ;;  %v4055_v31 = vld [vmem:[%s4014_s14 + $0x38] sm:$0xff]  ;;  %v4059_v32 = vld [vmem:[%s4014_s14 + $0x40] sm:$0xff]  ;;  %v4063_v33 = vld [vmem:[%s4014_s14 + $0x48] sm:$0xff]  ;;  %v406_v44 = vmul.f32 %v4043_v28, %v4043_v28  ;;  %v407_v45 = vmul.f32 %v4047_v29, %v4047_v29  ;;  %v408_v46 = vmul.f32 %v4051_v30, %v4051_v30  ;;  %p3645_p5 = pnand %p3644_p10, %p3956_p3  ;;  %p3651_p1 = scmp.lt.s32.totalorder %s3649_s23, %s3643_s13 }
  0xae   : > { %3246 = vmatprep.subr.bf16.mxu0 %v3245_v8  ;;  %v4067_v34 = vld [vmem:[%s4014_s14 + $0x50] sm:$0xff]  ;;  %v4071_v35 = vld [vmem:[%s4014_s14 + $0x58] sm:$0xff]  ;;  %v4075_v36 = vld [vmem:[%s4014_s14 + $0x60] sm:$0xff]  ;;  %v409_v47 = vmul.f32 %v4055_v31, %v4055_v31  ;;  %v410_v48 = vmul.f32 %v4059_v32, %v4059_v32  ;;  %v411_v49 = vmul.f32 %v4063_v33, %v4063_v33 }
  0xaf   : > { %v4079_v37 = vld [vmem:[%s4014_s14 + $0x68] sm:$0xff]  ;;  %v4083_v38 = vld [vmem:[%s4014_s14 + $0x70] sm:$0xff]  ;;  %v4089_v39 = vld [vmem:[%s4014_s14 + $0x78] sm:$0xff]  ;;  %v412_v50 = vmul.f32 %v4067_v34, %v4067_v34  ;;  %v413_v51 = vmul.f32 %v4071_v35, %v4071_v35  ;;  %v414_v52 = vmul.f32 %v4075_v36, %v4075_v36  ;;  %p3646_p7 = pneg %p3645_p5  ;;  %p3652_p2 = por %p3651_p1, %p3650_p12 }
  0xb0   : > { %v415_v53 = vmul.f32 %v4079_v37, %v4079_v37  ;;  %v416_v54 = vmul.f32 %v4083_v38, %v4083_v38  ;;  %v417_v55 = vmul.f32 %v4089_v39, %v4089_v39  ;;  %v3364_v56 = vld [vmem:[#allocation7 + $0x4] ss:$8 sps:$4 sm:$0xff]   ;;  %v3366_v57 = vld [vmem:[#allocation7] ss:$8 sps:$4 sm:$0xff]   ;;  %v3367_v58 = vld [vmem:[#allocation7 + $0x14] ss:$8 sps:$4 sm:$0xff]  }
  0xb1   : > { %3248 = vmatpush3.bf16.msra.mxu0 %v3245_v8  ;;  %871 = vmatprep.subr.bf16.mxu1 %v3364_v56  ;;  %v3369_v59 = vld [vmem:[#allocation7 + $0x10] ss:$8 sps:$4 sm:$0xff]   ;;  %v3370_v60 = vld [vmem:[#allocation7 + $0x24] ss:$8 sps:$4 sm:$0xff]   ;;  %v3372_v61 = vld [vmem:[#allocation7 + $0x20] ss:$8 sps:$4 sm:$0xff]   ;;  %p3653_p13 = pnand %p3652_p2, %p3646_p7 }
  0xb2   : > { %3250 = vmatprep.subr.bf16.mxu0 %v3249_v12  ;;  %872 = vmatpush1.bf16.msra.mxu1 %v3366_v57  ;;  %v3373_v62 = vld [vmem:[#allocation7 + $0x34] ss:$8 sps:$4 sm:$0xff]   ;;  %v3375_v63 = vld [vmem:[#allocation7 + $0x30] ss:$8 sps:$4 sm:$0xff]   ;;  %v3376_v0 = vld [vmem:[#allocation7 + $0x44] ss:$8 sps:$4 sm:$0xff]  }
  0xb3   : > { %873 = vmatprep.subr.bf16.mxu1 %v3367_v58  ;;  %v3378_v1 = vld [vmem:[#allocation7 + $0x40] ss:$8 sps:$4 sm:$0xff]   ;;  %v3379_v2 = vld [vmem:[#allocation7 + $0x54] ss:$8 sps:$4 sm:$0xff]   ;;  %v3381_v3 = vld [vmem:[#allocation7 + $0x50] ss:$8 sps:$4 sm:$0xff]  }
  0xb4   : > { %v3382_v4 = vld [vmem:[#allocation7 + $0x64] ss:$8 sps:$4 sm:$0xff]   ;;  %v3384_v5 = vld [vmem:[#allocation7 + $0x60] ss:$8 sps:$4 sm:$0xff]   ;;  %v3385_v6 = vld [vmem:[#allocation7 + $0x74] ss:$8 sps:$4 sm:$0xff]  }
  0xb5   : > { %3252 = vmatpush3.bf16.msra.mxu0 %v3249_v12  ;;  %v3387_v7 = vld [vmem:[#allocation7 + $0x70] ss:$8 sps:$4 sm:$0xff]   ;;  %v3728_v8 = vmov 0   ;;  %v3388_v10 = vld [vmem:[#allocation8 + $0x40] sm:$0xff]   ;;  %v3390_v12 = vld [vmem:[#allocation8 + $0x48] sm:$0xff]  }
  0xb6   : > { %3254 = vmatprep.subr.bf16.mxu0 %v3253_v17  ;;  %874 = vmatpush1.bf16.msra.mxu1 %v3369_v59  ;;  %v3389_v11 = vld [vmem:[#allocation8] sm:$0xff]   ;;  %v3391_v13 = vld [vmem:[#allocation8 + $0x8] sm:$0xff]   ;;  %v3392_v15 = vld [vmem:[#allocation8 + $0x50] sm:$0xff]  }
  0xb7   : > { %875 = vmatprep.subr.bf16.mxu1 %v3370_v60  ;;  %903 = vmatprep.mubr.bf16.mxu1 %v3728_v8  ;;  %v3397_v14 = vld [vmem:[#allocation8 + $0xc0] sm:$0xff]   ;;  %v3393_v16 = vld [vmem:[#allocation8 + $0x10] sm:$0xff]   ;;  %v3395_v18 = vld [vmem:[#allocation8 + $0x18] sm:$0xff]  }
  0xb8   : > { %v3396_v19 = vld [vmem:[#allocation8 + $0x60] sm:$0xff]   ;;  %v3402_v21 = vld [vmem:[#allocation8 + $0x68] sm:$0xff]   ;;  %vm2634_vm4 = vmneg %vm1049_vm0 }
  0xb9   : > { %3256 = vmatpush3.bf16.msra.mxu0 %v3253_v17  ;;  %v3394_v17 = vld [vmem:[#allocation8 + $0x58] sm:$0xff]   ;;  %vm4247_vm7 = vmneg %vm1098_vm1 }
  0xba   : > { %3258 = vmatprep.subr.bf16.mxu0 %v3257_v20  ;;  %876 = vmatpush1.bf16.msra.mxu1 %v3372_v61  ;;  %vm4252_vm8 = vmneg %vm1000_vm2 }
  0xbb   : > { %877 = vmatprep.subr.bf16.mxu1 %v3373_v62  ;;  %vm4257_vm10 = vmpackc.low %vm3729_vm9, %vm2634_vm4 }
  0xbc   : > { %vm4266_vm11 = vmpackc.low %vm3729_vm9, %vm4247_vm7 }
  0xbd   : > { %3260 = vmatpush3.bf16.msra.mxu0 %v3257_v20  ;;  %v3398_v20 = vld [vmem:[#allocation8 + $0x20] sm:$0xff]   ;;  %vm4274_vm12 = vmpackc.low %vm3729_vm9, %vm4252_vm8 }
  0xbe   : > { %3262 = vmatprep.subr.bf16.mxu0 %v3261_v23  ;;  %878 = vmatpush1.bf16.msra.mxu1 %v3375_v63  ;;  %vm4443_vm13 = vmpackc.low %vm1245_vm3, %vm3729_vm9 }
  0xbf   : > { %879 = vmatprep.subr.bf16.mxu1 %v3376_v0  ;;  %vm4450_vm14 = vmpackc.low %vm1196_vm5, %vm3729_vm9 }
  0xc0   : > { %vm4470_vm15 = vmpackc.low %vm1147_vm6, %vm3729_vm9 }
  0xc1   : > { %3264 = vmatpush3.bf16.msra.mxu0 %v3261_v23  ;;  %v3404_v23 = vld [vmem:[#allocation8 + $0x28] sm:$0xff]  }
  0xc2   : > { %3266 = vmatprep.subr.bf16.mxu0 %v3265_v24  ;;  %880 = vmatpush1.bf16.msra.mxu1 %v3378_v1 }
  0xc3   : > { %881 = vmatprep.subr.bf16.mxu1 %v3379_v2 }
  0xc5   : > { %3268 = vmatpush3.bf16.msra.mxu0 %v3265_v24 }
  0xc6   : > { %882 = vmatpush1.bf16.msra.mxu1 %v3381_v3  ;;  %2869 = vmatprep.subr.bf16.mxu0 %v3388_v10 }
  0xc7   : > { %883 = vmatprep.subr.bf16.mxu1 %v3382_v4 }
  0xc8   : > { %3126 = vmatmul.mubr.f32.vlgmr.msra.gmra.mrb[0].mxu0 %v4033_v25 }
  0xc9   : > { %3128 = vmatprep.mubr.f32.mxu0 %v4036_v26  ;;  %2870 = vmatpush3.bf16.msra.mxu0 %v3389_v11 }
  0xca   : > { %884 = vmatpush1.bf16.msra.mxu1 %v3384_v5  ;;  %2871 = vmatprep.subr.bf16.mxu0 %v3390_v12 }
  0xcb   : > { %885 = vmatprep.subr.bf16.mxu1 %v3385_v6 }
  0xcc   : > { %3129 = vmatmul.mubr.f32.gmra.mrb[2].mxu0 %v4039_v27 }
  0xcd   : > { %3131 = vmatprep.mubr.f32.mxu0 %v4043_v28  ;;  %2872 = vmatpush3.bf16.msra.mxu0 %v3391_v13 }
  0xce   : > { %886 = vmatpush1.bf16.msra.mxu1 %v3387_v7  ;;  %2873 = vmatprep.subr.bf16.mxu0 %v3392_v15 }
  0xcf   : > { %2933 = vmatprep.subr.bf16.mxu1 %v3397_v14 }
  0xd0   : > { %3132 = vmatmul.mubr.f32.gmra.mrb[4].mxu0 %v4047_v29 }
  0xd1   : > { %3134 = vmatprep.mubr.f32.mxu0 %v4051_v30  ;;  %2874 = vmatpush3.bf16.msra.mxu0 %v3393_v16 }
  0xd2   : > { %2875 = vmatprep.subr.bf16.mxu0 %v3394_v17 }
  0xd4   : > { %3135 = vmatmul.mubr.f32.gmra.mrb[6].mxu0 %v4055_v31 }
  0xd5   : > { %3137 = vmatprep.mubr.f32.mxu0 %v4059_v32  ;;  %2876 = vmatpush3.bf16.msra.mxu0 %v3395_v18 }
  0xd6   : > { %2877 = vmatprep.subr.bf16.mxu0 %v3396_v19 }
  0xd8   : > { %3138 = vmatmul.mubr.f32.gmra.mrb[8].mxu0 %v4063_v33 }
  0xd9   : > { %3140 = vmatprep.mubr.f32.mxu0 %v4067_v34  ;;  %2878 = vmatpush3.bf16.msra.mxu0 %v3398_v20 }
  0xda   : > { %2879 = vmatprep.subr.bf16.mxu0 %v3402_v21 }
  0xdc   : > { %3141 = vmatmul.mubr.f32.gmra.mrb[10].mxu0 %v4071_v35 }
  0xdd   : > { %3143 = vmatprep.mubr.f32.mxu0 %v4075_v36  ;;  %2880 = vmatpush3.bf16.msra.mxu0 %v3404_v23 }
  0xe0   : > { %3144 = vmatmul.mubr.f32.gmra.mrb[12].mxu0 %v4079_v37 }
  0xe1   : > { %3146 = vmatprep.mubr.f32.mxu0 %v4083_v38 }
  0xe4   : > { %3147 = vmatmul.mubr.f32.gmra.mrb[14].mxu0 %v4089_v39 }
  0xe5   : > { %3149 = vmatprep.mubr.f32.mxu0 %v402_v40  ;;  %v3408_v40 = vld [vmem:[#allocation8 + $0x70] sm:$0xff]  }
  0xe6   : > { %2881 = vmatprep.subr.bf16.mxu0 %v3408_v40 }
  0xe8   : > { %3150 = vmatmul.mubr.f32.gmra.mrb[16].mxu0 %v403_v41 }
  0xe9   : > { %3152 = vmatprep.mubr.f32.mxu0 %v404_v42  ;;  %v3410_v42 = vld [vmem:[#allocation8 + $0x30] sm:$0xff]  }
  0xea   : > { %2882 = vmatpush3.bf16.msra.mxu0 %v3410_v42 }
  0xec   : > { %3153 = vmatmul.mubr.f32.gmra.mrb[18].mxu0 %v405_v43 }
  0xed   : > { %3155 = vmatprep.mubr.f32.mxu0 %v406_v44 }
  0xf0   : > { %3156 = vmatmul.mubr.f32.gmra.mrb[20].mxu0 %v407_v45 }
  0xf1   : > { %3158 = vmatprep.mubr.f32.mxu0 %v408_v46 }
  0xf4   : > { %3159 = vmatmul.mubr.f32.gmra.mrb[22].mxu0 %v409_v47 }
  0xf5   : > { %3161 = vmatprep.mubr.f32.mxu0 %v410_v48 }
  0xf8   : > { %3162 = vmatmul.mubr.f32.gmra.mrb[24].mxu0 %v411_v49 }
  0xf9   : > { %3164 = vmatprep.mubr.f32.mxu0 %v412_v50 }
  0xfc   : > { %3165 = vmatmul.mubr.f32.gmra.mrb[26].mxu0 %v413_v51 }
  0xfd   : > { %3167 = vmatprep.mubr.f32.mxu0 %v414_v52 }
 0x100   : > { %3168 = vmatmul.mubr.f32.gmra.mrb[28].mxu0 %v415_v53 }
 0x101   : > { %3170 = vmatprep.mubr.f32.mxu0 %v416_v54 }
 0x104   : > { %3171 = vmatmul.mubr.f32.gmra.mrb[30].mxu0 %v417_v55 }
 0x19b   : > { %v4125_v22 = vpop.f32.mrb[0].mxu0 }
 0x19c   : > { %v4127_v24 = vpop.f32.mrb[1].mxu0  ;;  %v660_v56 = vmul.f32 %v4125_v22, %v4125_v22  ;;  %v692_v40 = vsub.f32 %v4033_v25, %v4125_v22 }
 0x19d   : > { %v659_v57 = vmul.f32 %v4127_v24, %v4127_v24 }
 0x19f   : > { %v4129_v41 = vpop.f32.mrb[2].mxu0 }
 0x1a0   : > { %v4131_v43 = vpop.f32.mrb[3].mxu0  ;;  %v662_v62 = vmul.f32 %v4129_v41, %v4129_v41 }
 0x1a1   : > { %v661_v0 = vmul.f32 %v4131_v43, %v4131_v43 }
 0x1a3   : > { %v4133_v44 = vpop.f32.mrb[4].mxu0 }
 0x1a4   : > { %v4135_v45 = vpop.f32.mrb[5].mxu0  ;;  %v664_v6 = vmul.f32 %v4133_v44, %v4133_v44 }
 0x1a5   : > { %v663_v10 = vmul.f32 %v4135_v45, %v4135_v45 }
 0x1a7   : > { %v4137_v46 = vpop.f32.mrb[6].mxu0 }
 0x1a8   : > { %v4139_v47 = vpop.f32.mrb[7].mxu0  ;;  %v666_v16 = vmul.f32 %v4137_v46, %v4137_v46 }
 0x1a9   : > { %v665_v18 = vmul.f32 %v4139_v47, %v4139_v47 }
 0x1ab   : > { %v4141_v48 = vpop.f32.mrb[8].mxu0 }
 0x1ac   : > { %v4143_v49 = vpop.f32.mrb[9].mxu0 }
 0x1af   : > { %v4145_v50 = vpop.f32.mrb[10].mxu0 }
 0x1b0   : > { %v4147_v51 = vpop.f32.mrb[11].mxu0 }
 0x1b3   : > { %v4149_v52 = vpop.f32.mrb[12].mxu0 }
 0x1b4   : > { %v4151_v53 = vpop.f32.mrb[13].mxu0 }
 0x1b7   : > { %v4153_v54 = vpop.f32.mrb[14].mxu0 }
 0x1b8   : > { %v4155_v55 = vpop.f32.mrb[15].mxu0 }
 0x1bb   : > { %v3151_v58 = vpop.f32.mrb[16].mxu0 }
 0x1bc   : > { %v676_v59 = vsub.f32 %v3151_v58, %v660_v56  ;;  %v580_v60 = vpop.f32.mrb[17].mxu0  ;;  %v668_v58 = vmul.f32 %v4141_v48, %v4141_v48 }
 0x1bd   : > { %v675_v61 = vsub.f32 %v580_v60, %v659_v57  ;;  %v691_v57 = vsub.f32 %v4029_v9, %v4127_v24  ;;  %v3399_v24 = vld [vmem:[#allocation8 + $0x80] sm:$0xff]  }
 0x1be   : > { %v708_v63 = vadd.f32 1e-06, %v676_v59 }
 0x1bf   : > { %v707_v1 = vadd.f32 1e-06, %v675_v61  ;;  %v3154_v2 = vpop.f32.mrb[18].mxu0  ;;  %v667_v61 = vmul.f32 %v4143_v49, %v4143_v49 }
 0x1c0   : > { %3452 = vrsqrt.f32 %v708_v63  ;;  %v678_v3 = vsub.f32 %v3154_v2, %v662_v62  ;;  %v590_v4 = vpop.f32.mrb[19].mxu0  ;;  %v694_v2 = vsub.f32 %v4039_v27, %v4129_v41 }
 0x1c1   : > { %3454 = vrsqrt.f32 %v707_v1  ;;  %v677_v5 = vsub.f32 %v590_v4, %v661_v0  ;;  %v693_v4 = vsub.f32 %v4036_v26, %v4131_v43  ;;  %v696_v26 = vsub.f32 %v4047_v29, %v4133_v44 }
 0x1c2   : > { %v710_v7 = vadd.f32 1e-06, %v678_v3  ;;  %v671_v29 = vmul.f32 %v4151_v53, %v4151_v53 }
 0x1c3   : > { %v709_v11 = vadd.f32 1e-06, %v677_v5  ;;  %v3157_v12 = vpop.f32.mrb[20].mxu0  ;;  %v670_v5 = vmul.f32 %v4145_v50, %v4145_v50 }
 0x1c4   : > { %3456 = vrsqrt.f32 %v710_v7  ;;  %v680_v13 = vsub.f32 %v3157_v12, %v664_v6  ;;  %v600_v14 = vpop.f32.mrb[21].mxu0  ;;  %v669_v12 = vmul.f32 %v4147_v51, %v4147_v51 }
 0x1c5   : > { %3458 = vrsqrt.f32 %v709_v11  ;;  %v679_v15 = vsub.f32 %v600_v14, %v663_v10  ;;  %v3400_v10 = vld [vmem:[#allocation8 + $0xc8] sm:$0xff]  }
 0x1c6   : > { %v712_v17 = vadd.f32 1e-06, %v680_v13 }
 0x1c7   : > { %v711_v19 = vadd.f32 1e-06, %v679_v15  ;;  %v3160_v20 = vpop.f32.mrb[22].mxu0 }
 0x1c8   : > { %3460 = vrsqrt.f32 %v712_v17  ;;  %v682_v21 = vsub.f32 %v3160_v20, %v666_v16  ;;  %v610_v23 = vpop.f32.mrb[23].mxu0  ;;  %v3401_v17 = vld [vmem:[#allocation8 + $0x88] sm:$0xff]   ;;  %v672_v20 = vmul.f32 %v4149_v52, %v4149_v52 }
 0x1c9   : > { %3462 = vrsqrt.f32 %v711_v19  ;;  %v681_v42 = vsub.f32 %v610_v23, %v665_v18  ;;  %v695_v19 = vsub.f32 %v4043_v28, %v4135_v45  ;;  %v698_v28 = vsub.f32 %v4055_v31, %v4137_v46 }
 0x1ca   : > { %v3453_v56 = vpop.eup %3452  ;;  %v714_v59 = vadd.f32 1e-06, %v682_v21 }
 0x1cb   : > { %v3455_v60 = vpop.eup %3454  ;;  %v713_v62 = vadd.f32 1e-06, %v681_v42  ;;  %v3163_v63 = vpop.f32.mrb[24].mxu0  ;;  %v740_v0 = vmul.f32 %v3453_v56, %v692_v40  ;;  %v3403_v40 = vld [vmem:[#allocation8 + $0xd0] sm:$0xff]  }
 0x1cc   : > { %3464 = vrsqrt.f32 %v714_v59  ;;  %v684_v1 = vsub.f32 %v3163_v63, %v668_v58  ;;  %v620_v25 = vpop.f32.mrb[25].mxu0  ;;  %v739_v22 = vmul.f32 %v3455_v60, %v691_v57  ;;  %v697_v63 = vsub.f32 %v4051_v30, %v4139_v47 }
 0x1cd   : > { %3466 = vrsqrt.f32 %v713_v62  ;;  %v683_v9 = vsub.f32 %v620_v25, %v667_v61  ;;  %v3405_v61 = vld [vmem:[#allocation8 + $0x90] sm:$0xff]   ;;  %v700_v30 = vsub.f32 %v4063_v33, %v4141_v48  ;;  %v702_v33 = vsub.f32 %v4071_v35, %v4145_v50  ;;  %v3411_v48 = vld [vmem:[#allocation8 + $0xa0] sm:$0xff]   ;;  %v3413_v35 = vld [vmem:[#allocation8 + $0xa8] sm:$0xff]  }
 0x1ce   : > { %v3457_v3 = vpop.eup %3456  ;;  %v716_v6 = vadd.f32 1e-06, %v684_v1  ;;  %v755_v7 = vpack.c.bf16 %v740_v0, %v739_v22  ;;  %v674_v0 = vmul.f32 %v4153_v54, %v4153_v54  ;;  %v3406_v22 = vld [vmem:[#allocation8 + $0xd8] sm:$0xff]  }
 0x1cf   : > { %v3459_v11 = vpop.eup %3458  ;;  %v715_v13 = vadd.f32 1e-06, %v683_v9  ;;  %v3166_v14 = vpop.f32.mrb[26].mxu0  ;;  %v742_v27 = vmul.f32 %v3457_v3, %v694_v2  ;;  %v673_v9 = vmul.f32 %v4155_v55, %v4155_v55 }
 0x1d0   : > { %3468 = vrsqrt.f32 %v716_v6  ;;  %v686_v41 = vsub.f32 %v3166_v14, %v670_v5  ;;  %v630_v15 = vpop.f32.mrb[27].mxu0  ;;  %904 = vmatmul.mubr.bf16.vlgmr.msra.gmra.mrb[0].mxu1 %v755_v7  ;;  %v741_v16 = vmul.f32 %v3459_v11, %v693_v4  ;;  %v3407_v6 = vld [vmem:[#allocation8 + $0x98] sm:$0xff]  }
 0x1d1   : > { %3470 = vrsqrt.f32 %v715_v13  ;;  %v685_v43 = vsub.f32 %v630_v15, %v669_v12  ;;  %913 = vmatprep.mubr.bf16.mxu1 %v3728_v8  ;;  %2934 = vmatpush3.bf16.msra.mxu1 %v3399_v24  ;;  %v3409_v13 = vld [vmem:[#allocation8 + $0xe0] sm:$0xff]  }
 0x1d2   : > { %v3461_v18 = vpop.eup %3460  ;;  %v718_v21 = vadd.f32 1e-06, %v686_v41  ;;  %v756_v23 = vpack.c.bf16 %v742_v27, %v741_v16  ;;  %2935 = vmatprep.subr.bf16.mxu1 %v3400_v10  ;;  %v699_v10 = vsub.f32 %v4059_v32, %v4143_v49  ;;  %v3412_v49 = vld [vmem:[#allocation8 + $0xe8] sm:$0xff]  }
 0x1d3   : > { %v3463_v42 = vpop.eup %3462  ;;  %v717_v44 = vadd.f32 1e-06, %v685_v43  ;;  %v3169_v56 = vpop.f32.mrb[28].mxu0  ;;  %v744_v57 = vmul.f32 %v3461_v18, %v696_v26  ;;  %v701_v26 = vsub.f32 %v4067_v34, %v4147_v51 }
 0x1d4   : > { %3472 = vrsqrt.f32 %v718_v21  ;;  %v688_v58 = vsub.f32 %v3169_v56, %v672_v20  ;;  %v640_v59 = vpop.f32.mrb[29].mxu0  ;;  %v743_v60 = vmul.f32 %v3463_v42, %v695_v19  ;;  %v704_v19 = vsub.f32 %v4079_v37, %v4149_v52 }
 0x1d5   : > { %3474 = vrsqrt.f32 %v717_v44  ;;  %v687_v45 = vsub.f32 %v640_v59, %v671_v29  ;;  %2936 = vmatpush3.bf16.msra.mxu1 %v3401_v17  ;;  %v703_v20 = vsub.f32 %v4075_v36, %v4151_v53  ;;  %v705_v37 = vsub.f32 %v4083_v38, %v4155_v55  ;;  %v3417_v38 = vld [vmem:[#allocation8 + $0xb0] sm:$0xff]   ;;  %v3414_v53 = vld [vmem:[#allocation8 + $0x78] sm:$0xff]   ;;  %v4228_v59 = vld [vmem:[#allocation8 + $0x180] sm:$0xff]  }
 0x1d6   : > { %v3465_v62 = vpop.eup %3464  ;;  %v720_v1 = vadd.f32 1e-06, %v688_v58  ;;  %v757_v25 = vpack.c.bf16 %v744_v57, %v743_v60  ;;  %2937 = vmatprep.subr.bf16.mxu1 %v3403_v40  ;;  %v706_v40 = vsub.f32 %v4089_v39, %v4153_v54  ;;  %v3415_v39 = vld [vmem:[#allocation8 + $0xf0] sm:$0xff]   ;;  %v3416_v54 = vld [vmem:[#allocation8 + $0x38] sm:$0xff]   ;;  %2883 = vmatprep.subr.bf16.mxu0 %v3414_v53  ;;  %v3420_v58 = vld [vmem:[#allocation8 + $0x140] sm:$0xff]  }
 0x1d7   : > { %v3467_v2 = vpop.eup %3466  ;;  %v719_v31 = vadd.f32 1e-06, %v687_v45  ;;  %v3172_v46 = vpop.f32.mrb[30].mxu0  ;;  %v746_v24 = vmul.f32 %v3465_v62, %v698_v28  ;;  %v3418_v55 = vld [vmem:[#allocation8 + $0xf8] sm:$0xff]   ;;  %2884 = vmatpush3.bf16.msra.mxu0 %v3416_v54  ;;  %v779_v45 = vld [vmem:[%s4766_s5] sm:$0x3] }
 0x1d8   : > { %3476 = vrsqrt.f32 %v720_v1  ;;  %v690_v3 = vsub.f32 %v3172_v46, %v674_v0  ;;  %v650_v4 = vpop.f32.mrb[31].mxu0  ;;  %914 = vmatmul.mubr.bf16.gmra.mrb[4].mxu1 %v756_v23  ;;  %v745_v5 = vmul.f32 %v3467_v2, %v697_v63  ;;  %v3419_v57 = vld [vmem:[#allocation8 + $0xb8] sm:$0xff]   ;;  %2997 = vmatprep.subr.bf16.mxu0 %v3420_v58 }
 0x1d9   : > { %3478 = vrsqrt.f32 %v719_v31  ;;  %v689_v47 = vsub.f32 %v650_v4, %v673_v9  ;;  %923 = vmatprep.mubr.bf16.mxu1 %v3728_v8  ;;  %2938 = vmatpush3.bf16.msra.mxu1 %v3405_v61  ;;  %v3425_v31 = vld [vmem:[#allocation8 + $0x110] sm:$0xff]  }
 0x1da   : > { %v3469_v7 = vpop.eup %3468  ;;  %v722_v11 = vadd.f32 1e-06, %v690_v3  ;;  %v758_v12 = vpack.c.bf16 %v746_v24, %v745_v5  ;;  %2939 = vmatprep.subr.bf16.mxu1 %v3406_v22 }
 0x1db   : > { %v3471_v14 = vpop.eup %3470  ;;  %v721_v27 = vadd.f32 1e-06, %v689_v47  ;;  %v748_v41 = vmul.f32 %v3469_v7, %v700_v30 }
 0x1dc   : > { %3480 = vrsqrt.f32 %v722_v11  ;;  %v747_v15 = vmul.f32 %v3471_v14, %v699_v10 }
 0x1dd   : > { %3482 = vrsqrt.f32 %v721_v27  ;;  %2940 = vmatpush3.bf16.msra.mxu1 %v3407_v6  ;;  %v3444_v27 = vld [vmem:[#allocation10] sm:$0xff]  }
 0x1de   : > { %v3473_v16 = vpop.eup %3472  ;;  %v759_v32 = vpack.c.bf16 %v748_v41, %v747_v15  ;;  %2941 = vmatprep.subr.bf16.mxu1 %v3409_v13 }
 0x1df   : > { %v3475_v43 = vpop.eup %3474  ;;  %v750_v17 = vmul.f32 %v3473_v16, %v702_v33 }
 0x1e0   : > { %924 = vmatmul.mubr.bf16.gmra.mrb[8].mxu1 %v757_v25  ;;  %v749_v18 = vmul.f32 %v3475_v43, %v701_v26  ;;  %v3431_v43 = vld [vmem:[#allocation8 + $0x188] sm:$0xff]  }
 0x1e1   : > { %933 = vmatprep.mubr.bf16.mxu1 %v3728_v8  ;;  %2942 = vmatpush3.bf16.msra.mxu1 %v3411_v48  ;;  %v3445_v26 = vld [vmem:[#allocation10 + $0x8] sm:$0xff]  }
 0x1e2   : > { %v3477_v50 = vpop.eup %3476  ;;  %v760_v21 = vpack.c.bf16 %v750_v17, %v749_v18  ;;  %2943 = vmatprep.subr.bf16.mxu1 %v3412_v49  ;;  %v3421_v49 = vld [vmem:[#allocation8 + $0x100] sm:$0xff]  }
 0x1e3   : > { %v3479_v34 = vpop.eup %3478  ;;  %v752_v51 = vmul.f32 %v3477_v50, %v704_v19 }
 0x1e4   : > { %v751_v23 = vmul.f32 %v3479_v34, %v703_v20 }
 0x1e5   : > { %2944 = vmatpush3.bf16.msra.mxu1 %v3413_v35  ;;  %v3422_v35 = vld [vmem:[#allocation8 + $0x148] sm:$0xff]  }
 0x1e6   : > { %v3481_v42 = vpop.eup %3480  ;;  %v761_v52 = vpack.c.bf16 %v752_v51, %v751_v23  ;;  %2945 = vmatprep.subr.bf16.mxu1 %v3415_v39 }
 0x1e7   : > { %v3483_v29 = vpop.eup %3482  ;;  %v754_v44 = vmul.f32 %v3481_v42, %v706_v40 }
 0x1e8   : > { %934 = vmatmul.mubr.bf16.gmra.mrb[12].mxu1 %v758_v12  ;;  %v753_v56 = vmul.f32 %v3483_v29, %v705_v37 }
 0x1e9   : > { %943 = vmatprep.mubr.bf16.mxu1 %v3728_v8  ;;  %2946 = vmatpush3.bf16.msra.mxu1 %v3417_v38 }
 0x1ea   : > { %v762_v36 = vpack.c.bf16 %v754_v44, %v753_v56  ;;  %2947 = vmatprep.subr.bf16.mxu1 %v3418_v55  ;;  %v3423_v44 = vld [vmem:[#allocation8 + $0x108] sm:$0xff]   ;;  %v3433_v56 = vld [vmem:[#allocation8 + $0x190] sm:$0xff]  }
 0x1eb   : > { %v3424_v55 = vld [vmem:[#allocation8 + $0x150] sm:$0xff]  }
 0x1ed   : > { %2948 = vmatpush3.bf16.msra.mxu1 %v3419_v57 }
 0x1ee   : > { %3173 = vmatprep.subr.bf16.mxu1 %v4228_v59 }
 0x1f0   : > { %944 = vmatmul.mubr.bf16.gmra.mrb[16].mxu1 %v759_v32 }
 0x1f1   : > { %953 = vmatprep.mubr.bf16.mxu1 %v3728_v8 }
 0x1f8   : > { %954 = vmatmul.mubr.bf16.gmra.mrb[20].mxu1 %v760_v21 }
 0x1f9   : > { %963 = vmatprep.mubr.bf16.mxu1 %v3728_v8 }
 0x200   : > { %964 = vmatmul.mubr.bf16.gmra.mrb[24].mxu1 %v761_v52 }
 0x201   : > { %973 = vmatprep.mubr.bf16.mxu1 %v3728_v8  ;;  %v781_v8 = vlaneseq }
 0x203   : > { %v4231_v60 = vshrl.u32 %v781_v8, 7 }
 0x205   : > { %v783_v28 = vsub.s32 0, %v4231_v60 }
 0x207   : > { %v4237_v61 = vrot.slane %v779_v45, %v783_v28 }
 0x208   : > { %974 = vmatmul.mubr.bf16.gmra.mrb[28].mxu1 %v762_v36 }
 0x2a3   : > { %v905_v62 = vpop.f32.mrb[0].mxu1 }
 0x2a4   : > { %v906_v63 = vadd.f32 %v905_v62, %v4237_v61  ;;  %v4240_v0 = vpop.f32.mrb[1].mxu1 }
 0x2a5   : > { %v909_v1 = vpop.f32.mrb[2].mxu1 }
 0x2a6   : > { %v910_v25 = vadd.f32 %v909_v1, %v4237_v61  ;;  %v4243_v22 = vpop.f32.mrb[3].mxu1  ;;  %v1050_v2 = vrot.slane %v906_v63, 6  ;;  %v1099_v9 = vrot.slane %v906_v63, 7  ;;  %v1001_v46 = vrot.slane %v906_v63, 5 }
 0x2a7   : > { %v1246_v24 = vrot.slane %v906_v63, 3  ;;  %v1197_v10 = vrot.slane %v906_v63, 2  ;;  %v1148_v15 = vrot.slane %v906_v63, 1 }
 0x2a8   : > { %v1297_v3 = vpack.c.bf16 %v910_v25, %v906_v63  ;;  %v1051_v4 = vrot.slane %v910_v25, 6  ;;  %v1100_v5 = vrot.slane %v910_v25, 7  ;;  %v1002_v30 = vrot.slane %v910_v25, 5 }
 0x2a9   : > { %v1247_v7 = vrot.slane %v910_v25, 3  ;;  %v1198_v11 = vrot.slane %v910_v25, 2  ;;  %v1149_v12 = vrot.slane %v910_v25, 1 }
 0x2aa   : > { %1934 = vmatprep.mubr.bf16.mxu1 %v1297_v3  ;;  %v1052_v13 = vsel %vm1049_vm0, %v1050_v2, %v1051_v4  ;;  %v1101_v14 = vsel %vm1098_vm1, %v1099_v9, %v1100_v5  ;;  %v1003_v41 = vsel %vm1000_vm2, %v1001_v46, %v1002_v30  ;;  %v3426_v4 = vld [vmem:[#allocation8 + $0x158] sm:$0xff]  }
 0x2ab   : > { %v915_v33 = vpop.f32.mrb[4].mxu1  ;;  %v2636_v48 = vpack.c.bf16 %v1052_v13, %v1050_v2  ;;  %v2700_v16 = vpack.c.bf16 %v1101_v14, %v1099_v9  ;;  %v2640_v32 = vpack.c.bf16 %v1003_v41, %v1001_v46  ;;  %v1248_v17 = vsel %vm1245_vm3, %v1246_v24, %v1247_v7  ;;  %v3435_v46 = vld [vmem:[#allocation8 + $0x198] sm:$0xff]  }
 0x2ac   : > { %v916_v18 = vadd.f32 %v915_v33, %v4237_v61  ;;  %v4280_v19 = vpop.f32.mrb[5].mxu1  ;;  %v4282_v50 = vpack.c.bf16 %v1247_v7, %v1248_v17  ;;  %v1199_v20 = vsel %vm1196_vm5, %v1197_v10, %v1198_v11  ;;  %v1150_v21 = vsel %vm1147_vm6, %v1148_v15, %v1149_v12  ;;  %v3427_v33 = vld [vmem:[#allocation8 + $0x118] sm:$0xff]  }
 0x2ad   : > { %v919_v34 = vpop.f32.mrb[6].mxu1  ;;  %2637 = vmatprep.mubr.msk.bf16.mxu0 %vm4257_vm10, %v2636_v48  ;;  %2701 = vmatmul.mubr.msk.bf16.vlgmr.msra.gmra.mrb[32].mxu1 %vm4266_vm11, %v2700_v16  ;;  %v4290_v51 = vpack.c.bf16 %v1198_v11, %v1199_v20  ;;  %v4292_v23 = vpack.c.bf16 %v1149_v12, %v1150_v21  ;;  %v3437_v48 = vld [vmem:[#allocation8 + $0x1a0] sm:$0xff]  }
 0x2ae   : > { %v920_v40 = vadd.f32 %v919_v34, %v4237_v61  ;;  %v4295_v42 = vpop.f32.mrb[7].mxu1  ;;  %2641 = vmatmul.mubr.msk.bf16.vlgmr.msra.gmra.mrb[32].mxu0 %vm4274_vm12, %v2640_v32  ;;  %3174 = vmatpush3.bf16.msra.mxu1 %v4228_v59  ;;  %v1053_v37 = vrot.slane %v916_v18, 6  ;;  %v1102_v52 = vrot.slane %v916_v18, 7  ;;  %v1004_v29 = vrot.slane %v916_v18, 5 }
 0x2af   : > { %2998 = vmatpush3.bf16.msra.mxu0 %v3421_v49  ;;  %3175 = vmatprep.subr.bf16.mxu1 %v3431_v43  ;;  %v1249_v36 = vrot.slane %v916_v18, 3  ;;  %v1200_v58 = vrot.slane %v916_v18, 2  ;;  %v1151_v63 = vrot.slane %v916_v18, 1 }
 0x2b0   : > { %v1304_v39 = vpack.c.bf16 %v920_v40, %v916_v18  ;;  %v1054_v38 = vrot.slane %v920_v40, 6  ;;  %v1103_v53 = vrot.slane %v920_v40, 7  ;;  %2999 = vmatprep.subr.bf16.mxu0 %v3422_v35  ;;  %v1005_v54 = vrot.slane %v920_v40, 5  ;;  %v3428_v35 = vld [vmem:[#allocation8 + $0x160] sm:$0xff]  }
 0x2b1   : > { %v1250_v57 = vrot.slane %v920_v40, 3  ;;  %v1201_v8 = vrot.slane %v920_v40, 2  ;;  %v1152_v28 = vrot.slane %v920_v40, 1 }
 0x2b2   : > { %1942 = vmatprep.mubr.bf16.mxu1 %v1304_v39  ;;  %v1055_v59 = vsel %vm1049_vm0, %v1053_v37, %v1054_v38  ;;  %v1104_v45 = vsel %vm1098_vm1, %v1102_v52, %v1103_v53  ;;  %v1006_v62 = vsel %vm1000_vm2, %v1004_v29, %v1005_v54  ;;  %3176 = vmatpush3.bf16.msra.mxu1 %v3431_v43  ;;  %v3430_v53 = vld [vmem:[#allocation8 + $0x120] sm:$0xff]   ;;  %v3439_v54 = vld [vmem:[#allocation8 + $0x1a8] sm:$0xff]  }
 0x2b3   : > { %v925_v1 = vpop.f32.mrb[8].mxu1  ;;  %v2644_v25 = vpack.c.bf16 %v1055_v59, %v1053_v37  ;;  %v2704_v2 = vpack.c.bf16 %v1104_v45, %v1102_v52  ;;  %v2648_v9 = vpack.c.bf16 %v1006_v62, %v1004_v29  ;;  %3000 = vmatpush3.bf16.msra.mxu0 %v3423_v44  ;;  %3177 = vmatprep.subr.bf16.mxu1 %v3433_v56 }
 0x2b4   : > { %v926_v24 = vadd.f32 %v925_v1, %v4237_v61  ;;  %v4304_v3 = vpop.f32.mrb[9].mxu1  ;;  %3001 = vmatprep.subr.bf16.mxu0 %v3424_v55  ;;  %v1251_v5 = vsel %vm1245_vm3, %v1249_v36, %v1250_v57  ;;  %v1202_v30 = vsel %vm1196_vm5, %v1200_v58, %v1201_v8  ;;  %v1153_v47 = vsel %vm1147_vm6, %v1151_v63, %v1152_v28  ;;  %v3432_v58 = vld [vmem:[#allocation8 + $0x168] sm:$0xff]  }
 0x2b5   : > { %v929_v7 = vpop.f32.mrb[10].mxu1  ;;  %2645 = vmatprep.mubr.msk.bf16.mxu0 %vm4257_vm10, %v2644_v25  ;;  %2705 = vmatmul.mubr.msk.bf16.gmra.mrb[36].mxu1 %vm4266_vm11, %v2704_v2  ;;  %v4313_v10 = vpack.c.bf16 %v1250_v57, %v1251_v5  ;;  %v4315_v11 = vpack.c.bf16 %v1201_v8, %v1202_v30  ;;  %v4322_v32 = vpack.c.bf16 %v1152_v28, %v1153_v47 }
 0x2b6   : > { %v930_v12 = vadd.f32 %v929_v7, %v4237_v61  ;;  %v4318_v13 = vpop.f32.mrb[11].mxu1  ;;  %2649 = vmatmul.mubr.msk.bf16.gmra.mrb[36].mxu0 %vm4274_vm12, %v2648_v9  ;;  %v1056_v14 = vrot.slane %v926_v24, 6  ;;  %3178 = vmatpush3.bf16.msra.mxu1 %v3433_v56  ;;  %v1105_v41 = vrot.slane %v926_v24, 7  ;;  %v1007_v15 = vrot.slane %v926_v24, 5 }
 0x2b7   : > { %3002 = vmatpush3.bf16.msra.mxu0 %v3425_v31  ;;  %3179 = vmatprep.subr.bf16.mxu1 %v3435_v46  ;;  %v1252_v16 = vrot.slane %v926_v24, 3  ;;  %v1203_v21 = vrot.slane %v926_v24, 2  ;;  %v1154_v44 = vrot.slane %v926_v24, 1 }
 0x2b8   : > { %v1311_v49 = vpack.c.bf16 %v930_v12, %v926_v24  ;;  %v1057_v43 = vrot.slane %v930_v12, 6  ;;  %v1106_v17 = vrot.slane %v930_v12, 7  ;;  %v1008_v18 = vrot.slane %v930_v12, 5  ;;  %3003 = vmatprep.subr.bf16.mxu0 %v3426_v4  ;;  %v3441_v24 = vld [vmem:[#allocation8 + $0x1b0] sm:$0xff]  }
 0x2b9   : > { %v1253_v20 = vrot.slane %v930_v12, 3  ;;  %v1204_v34 = vrot.slane %v930_v12, 2  ;;  %v1155_v40 = vrot.slane %v930_v12, 1 }
 0x2ba   : > { %1950 = vmatprep.mubr.bf16.mxu1 %v1311_v49  ;;  %v1058_v37 = vsel %vm1049_vm0, %v1056_v14, %v1057_v43  ;;  %v1107_v52 = vsel %vm1098_vm1, %v1105_v41, %v1106_v17  ;;  %v1009_v29 = vsel %vm1000_vm2, %v1007_v15, %v1008_v18  ;;  %3180 = vmatpush3.bf16.msra.mxu1 %v3435_v46  ;;  %v3434_v46 = vld [vmem:[#allocation8 + $0x128] sm:$0xff]  }
 0x2bb   : > { %v935_v56 = vpop.f32.mrb[12].mxu1  ;;  %v2652_v36 = vpack.c.bf16 %v1058_v37, %v1056_v14  ;;  %v2708_v39 = vpack.c.bf16 %v1107_v52, %v1105_v41  ;;  %v2656_v38 = vpack.c.bf16 %v1009_v29, %v1007_v15  ;;  %3004 = vmatpush3.bf16.msra.mxu0 %v3427_v33  ;;  %3181 = vmatprep.subr.bf16.mxu1 %v3437_v48  ;;  %v3436_v14 = vld [vmem:[#allocation8 + $0x170] sm:$0xff]   ;;  %v3440_v29 = vld [vmem:[#allocation8 + $0x178] sm:$0xff]  }
 0x2bc   : > { %v936_v55 = vadd.f32 %v935_v56, %v4237_v61  ;;  %v4328_v57 = vpop.f32.mrb[13].mxu1  ;;  %3005 = vmatprep.subr.bf16.mxu0 %v3428_v35  ;;  %v1254_v8 = vsel %vm1245_vm3, %v1252_v16, %v1253_v20  ;;  %v1205_v28 = vsel %vm1196_vm5, %v1203_v21, %v1204_v34  ;;  %v1156_v59 = vsel %vm1147_vm6, %v1154_v44, %v1155_v40 }
 0x2bd   : > { %v939_v45 = vpop.f32.mrb[14].mxu1  ;;  %2653 = vmatprep.mubr.msk.bf16.mxu0 %vm4257_vm10, %v2652_v36  ;;  %2709 = vmatmul.mubr.msk.bf16.gmra.mrb[40].mxu1 %vm4266_vm11, %v2708_v39  ;;  %v4337_v62 = vpack.c.bf16 %v1253_v20, %v1254_v8  ;;  %v4339_v63 = vpack.c.bf16 %v1204_v34, %v1205_v28  ;;  %v4346_v5 = vpack.c.bf16 %v1155_v40, %v1156_v59  ;;  %v3438_v34 = vld [vmem:[#allocation8 + $0x130] sm:$0xff]   ;;  %v3443_v40 = vld [vmem:[#allocation8 + $0x1b8] sm:$0xff]  }
 0x2be   : > { %v940_v1 = vadd.f32 %v939_v45, %v4237_v61  ;;  %v4342_v25 = vpop.f32.mrb[15].mxu1  ;;  %2657 = vmatmul.mubr.msk.bf16.gmra.mrb[40].mxu0 %vm4274_vm12, %v2656_v38  ;;  %v1059_v2 = vrot.slane %v936_v55, 6  ;;  %3182 = vmatpush3.bf16.msra.mxu1 %v3437_v48  ;;  %v1108_v9 = vrot.slane %v936_v55, 7  ;;  %v1010_v31 = vrot.slane %v936_v55, 5  ;;  %v3442_v59 = vld [vmem:[#allocation8 + $0x138] sm:$0xff]  }
 0x2bf   : > { %3006 = vmatpush3.bf16.msra.mxu0 %v3430_v53  ;;  %3183 = vmatprep.subr.bf16.mxu1 %v3439_v54  ;;  %v1255_v4 = vrot.slane %v936_v55, 3  ;;  %v1206_v15 = vrot.slane %v936_v55, 2  ;;  %v1157_v17 = vrot.slane %v936_v55, 1 }
 0x2c0   : > { %v1318_v30 = vpack.c.bf16 %v940_v1, %v936_v55  ;;  %v1060_v47 = vrot.slane %v940_v1, 6  ;;  %v1109_v7 = vrot.slane %v940_v1, 7  ;;  %v1011_v12 = vrot.slane %v940_v1, 5  ;;  %3007 = vmatprep.subr.bf16.mxu0 %v3432_v58 }
 0x2c1   : > { %v1256_v41 = vrot.slane %v940_v1, 3  ;;  %v1207_v33 = vrot.slane %v940_v1, 2  ;;  %v1158_v16 = vrot.slane %v940_v1, 1 }
 0x2c2   : > { %1958 = vmatprep.mubr.bf16.mxu1 %v1318_v30  ;;  %v1061_v48 = vsel %vm1049_vm0, %v1059_v2, %v1060_v47  ;;  %v1110_v49 = vsel %vm1098_vm1, %v1108_v9, %v1109_v7  ;;  %v1012_v43 = vsel %vm1000_vm2, %v1010_v31, %v1011_v12  ;;  %3184 = vmatpush3.bf16.msra.mxu1 %v3439_v54 }
 0x2c3   : > { %v945_v18 = vpop.f32.mrb[16].mxu1  ;;  %v2660_v35 = vpack.c.bf16 %v1061_v48, %v1059_v2  ;;  %v2712_v20 = vpack.c.bf16 %v1110_v49, %v1108_v9  ;;  %v2664_v21 = vpack.c.bf16 %v1012_v43, %v1010_v31  ;;  %3008 = vmatpush3.bf16.msra.mxu0 %v3434_v46  ;;  %3185 = vmatprep.subr.bf16.mxu1 %v3441_v24 }
 0x2c4   : > { %v946_v37 = vadd.f32 %v945_v18, %v4237_v61  ;;  %v4352_v52 = vpop.f32.mrb[17].mxu1  ;;  %3009 = vmatprep.subr.bf16.mxu0 %v3436_v14  ;;  %v1257_v44 = vsel %vm1245_vm3, %v1255_v4, %v1256_v41  ;;  %v1208_v56 = vsel %vm1196_vm5, %v1206_v15, %v1207_v33  ;;  %v1159_v36 = vsel %vm1147_vm6, %v1157_v17, %v1158_v16 }
 0x2c5   : > { %v949_v39 = vpop.f32.mrb[18].mxu1  ;;  %2661 = vmatprep.mubr.msk.bf16.mxu0 %vm4257_vm10, %v2660_v35  ;;  %2713 = vmatmul.mubr.msk.bf16.gmra.mrb[44].mxu1 %vm4266_vm11, %v2712_v20  ;;  %v4361_v38 = vpack.c.bf16 %v1256_v41, %v1257_v44  ;;  %v4363_v53 = vpack.c.bf16 %v1207_v33, %v1208_v56  ;;  %v4370_v1 = vpack.c.bf16 %v1158_v16, %v1159_v36 }
 0x2c6   : > { %v950_v54 = vadd.f32 %v949_v39, %v4237_v61  ;;  %v4366_v55 = vpop.f32.mrb[19].mxu1  ;;  %2665 = vmatmul.mubr.msk.bf16.gmra.mrb[44].mxu0 %vm4274_vm12, %v2664_v21  ;;  %v1062_v58 = vrot.slane %v946_v37, 6  ;;  %3186 = vmatpush3.bf16.msra.mxu1 %v3441_v24  ;;  %v1111_v8 = vrot.slane %v946_v37, 7  ;;  %v1013_v28 = vrot.slane %v946_v37, 5 }
 0x2c7   : > { %3010 = vmatpush3.bf16.msra.mxu0 %v3438_v34  ;;  %3187 = vmatprep.subr.bf16.mxu1 %v3443_v40  ;;  %v1258_v45 = vrot.slane %v946_v37, 3  ;;  %v1209_v30 = vrot.slane %v946_v37, 2  ;;  %v1160_v41 = vrot.slane %v946_v37, 1 }
 0x2c8   : > { %v1325_v2 = vpack.c.bf16 %v950_v54, %v946_v37  ;;  %v1063_v9 = vrot.slane %v950_v54, 6  ;;  %v1112_v31 = vrot.slane %v950_v54, 7  ;;  %v1014_v46 = vrot.slane %v950_v54, 5  ;;  %3011 = vmatprep.subr.bf16.mxu0 %v3440_v29 }
 0x2c9   : > { %v1259_v4 = vrot.slane %v950_v54, 3  ;;  %v1210_v47 = vrot.slane %v950_v54, 2  ;;  %v1161_v7 = vrot.slane %v950_v54, 1 }
 0x2ca   : > { %1966 = vmatprep.mubr.bf16.mxu1 %v1325_v2  ;;  %v1064_v24 = vsel %vm1049_vm0, %v1062_v58, %v1063_v9  ;;  %v1113_v12 = vsel %vm1098_vm1, %v1111_v8, %v1112_v31  ;;  %v1015_v14 = vsel %vm1000_vm2, %v1013_v28, %v1014_v46  ;;  %3188 = vmatpush3.bf16.msra.mxu1 %v3443_v40 }
 0x2cb   : > { %v955_v15 = vpop.f32.mrb[20].mxu1  ;;  %v2668_v33 = vpack.c.bf16 %v1064_v24, %v1062_v58  ;;  %v2716_v16 = vpack.c.bf16 %v1113_v12, %v1111_v8  ;;  %v2672_v48 = vpack.c.bf16 %v1015_v14, %v1013_v28  ;;  %3012 = vmatpush3.bf16.msra.mxu0 %v3442_v59  ;;  %v1260_v49 = vsel %vm1245_vm3, %v1258_v45, %v1259_v4 }
 0x2cc   : > { %v956_v43 = vadd.f32 %v955_v15, %v4237_v61  ;;  %v4377_v17 = vpop.f32.mrb[21].mxu1  ;;  %v4379_v18 = vpack.c.bf16 %v1259_v4, %v1260_v49  ;;  %v1211_v35 = vsel %vm1196_vm5, %v1209_v30, %v1210_v47  ;;  %v1162_v20 = vsel %vm1147_vm6, %v1160_v41, %v1161_v7  ;;  %3205 = vmatprep.subr.bf16.mxu1 %v3444_v27 }
 0x2cd   : > { %v959_v21 = vpop.f32.mrb[22].mxu1  ;;  %2669 = vmatprep.mubr.msk.bf16.mxu0 %vm4257_vm10, %v2668_v33  ;;  %2717 = vmatmul.mubr.msk.bf16.gmra.mrb[48].mxu1 %vm4266_vm11, %v2716_v16  ;;  %v4387_v34 = vpack.c.bf16 %v1210_v47, %v1211_v35  ;;  %v4389_v40 = vpack.c.bf16 %v1161_v7, %v1162_v20 }
 0x2ce   : > { %v960_v37 = vadd.f32 %v959_v21, %v4237_v61  ;;  %v4392_v29 = vpop.f32.mrb[23].mxu1  ;;  %2673 = vmatmul.mubr.msk.bf16.gmra.mrb[48].mxu0 %vm4274_vm12, %v2672_v48  ;;  %v1065_v44 = vrot.slane %v956_v43, 6  ;;  %v1114_v56 = vrot.slane %v956_v43, 7  ;;  %v1016_v36 = vrot.slane %v956_v43, 5 }
 0x2cf   : > { %v1261_v39 = vrot.slane %v956_v43, 3  ;;  %v1212_v45 = vrot.slane %v956_v43, 2  ;;  %v1163_v30 = vrot.slane %v956_v43, 1 }
 0x2d0   : > { %v1332_v54 = vpack.c.bf16 %v960_v37, %v956_v43  ;;  %v1066_v58 = vrot.slane %v960_v37, 6  ;;  %v1115_v8 = vrot.slane %v960_v37, 7  ;;  %v1017_v28 = vrot.slane %v960_v37, 5 }
 0x2d1   : > { %v1262_v59 = vrot.slane %v960_v37, 3  ;;  %v1213_v2 = vrot.slane %v960_v37, 2  ;;  %v1164_v9 = vrot.slane %v960_v37, 1 }
 0x2d2   : > { %1974 = vmatprep.mubr.bf16.mxu1 %v1332_v54  ;;  %v1067_v31 = vsel %vm1049_vm0, %v1065_v44, %v1066_v58  ;;  %v1116_v46 = vsel %vm1098_vm1, %v1114_v56, %v1115_v8  ;;  %v1018_v4 = vsel %vm1000_vm2, %v1016_v36, %v1017_v28 }
 0x2d3   : > { %v965_v47 = vpop.f32.mrb[24].mxu1  ;;  %v2676_v7 = vpack.c.bf16 %v1067_v31, %v1065_v44  ;;  %v2720_v24 = vpack.c.bf16 %v1116_v46, %v1114_v56  ;;  %v2680_v12 = vpack.c.bf16 %v1018_v4, %v1016_v36  ;;  %v1263_v14 = vsel %vm1245_vm3, %v1261_v39, %v1262_v59 }
 0x2d4   : > { %v966_v41 = vadd.f32 %v965_v47, %v4237_v61  ;;  %v4401_v15 = vpop.f32.mrb[25].mxu1  ;;  %v4403_v33 = vpack.c.bf16 %v1262_v59, %v1263_v14  ;;  %v1214_v16 = vsel %vm1196_vm5, %v1212_v45, %v1213_v2  ;;  %v1165_v48 = vsel %vm1147_vm6, %v1163_v30, %v1164_v9 }
 0x2d5   : > { %v969_v49 = vpop.f32.mrb[26].mxu1  ;;  %2677 = vmatprep.mubr.msk.bf16.mxu0 %vm4257_vm10, %v2676_v7  ;;  %2721 = vmatmul.mubr.msk.bf16.gmra.mrb[52].mxu1 %vm4266_vm11, %v2720_v24  ;;  %v4411_v43 = vpack.c.bf16 %v1213_v2, %v1214_v16  ;;  %v4413_v35 = vpack.c.bf16 %v1164_v9, %v1165_v48 }
 0x2d6   : > { %v970_v20 = vadd.f32 %v969_v49, %v4237_v61  ;;  %v4416_v21 = vpop.f32.mrb[27].mxu1  ;;  %2681 = vmatmul.mubr.msk.bf16.gmra.mrb[52].mxu0 %vm4274_vm12, %v2680_v12  ;;  %v1068_v37 = vrot.slane %v966_v41, 6  ;;  %v1117_v44 = vrot.slane %v966_v41, 7  ;;  %v1019_v56 = vrot.slane %v966_v41, 5 }
 0x2d7   : > { %v1264_v36 = vrot.slane %v966_v41, 3  ;;  %v1215_v59 = vrot.slane %v966_v41, 2  ;;  %v1166_v4 = vrot.slane %v966_v41, 1 }
 0x2d8   : > { %v1339_v39 = vpack.c.bf16 %v970_v20, %v966_v41  ;;  %v1069_v54 = vrot.slane %v970_v20, 6  ;;  %v1118_v58 = vrot.slane %v970_v20, 7  ;;  %v1020_v8 = vrot.slane %v970_v20, 5 }
 0x2d9   : > { %v1265_v28 = vrot.slane %v970_v20, 3  ;;  %v1216_v45 = vrot.slane %v970_v20, 2  ;;  %v1167_v2 = vrot.slane %v970_v20, 1 }
 0x2da   : > { %1982 = vmatprep.mubr.bf16.mxu1 %v1339_v39  ;;  %v1070_v9 = vsel %vm1049_vm0, %v1068_v37, %v1069_v54  ;;  %v1119_v31 = vsel %vm1098_vm1, %v1117_v44, %v1118_v58  ;;  %v1021_v46 = vsel %vm1000_vm2, %v1019_v56, %v1020_v8 }
 0x2db   : > { %v975_v30 = vpop.f32.mrb[28].mxu1  ;;  %v2684_v47 = vpack.c.bf16 %v1070_v9, %v1068_v37  ;;  %v2724_v7 = vpack.c.bf16 %v1119_v31, %v1117_v44  ;;  %v2688_v24 = vpack.c.bf16 %v1021_v46, %v1019_v56  ;;  %v1266_v12 = vsel %vm1245_vm3, %v1264_v36, %v1265_v28 }
 0x2dc   : > { %v976_v14 = vadd.f32 %v975_v30, %v4237_v61  ;;  %v4425_v16 = vpop.f32.mrb[29].mxu1  ;;  %v2797_v48 = vpack.c.bf16 %v1265_v28, %v1266_v12  ;;  %v1217_v49 = vsel %vm1196_vm5, %v1215_v59, %v1216_v45  ;;  %v1168_v20 = vsel %vm1147_vm6, %v1166_v4, %v1167_v2 }
 0x2dd   : > { %v979_v39 = vpop.f32.mrb[30].mxu1  ;;  %2685 = vmatprep.mubr.msk.bf16.mxu0 %vm4257_vm10, %v2684_v47  ;;  %2725 = vmatmul.mubr.msk.bf16.gmra.mrb[56].mxu1 %vm4266_vm11, %v2724_v7  ;;  %v2767_v41 = vpack.c.bf16 %v1216_v45, %v1217_v49  ;;  %v2770_v37 = vpack.c.bf16 %v1167_v2, %v1168_v20 }
 0x2de   : > { %v980_v44 = vadd.f32 %v979_v39, %v4237_v61  ;;  %v4434_v56 = vpop.f32.mrb[31].mxu1  ;;  %2689 = vmatmul.mubr.msk.bf16.gmra.mrb[56].mxu0 %vm4274_vm12, %v2688_v24  ;;  %v1071_v36 = vrot.slane %v976_v14, 6  ;;  %v1120_v54 = vrot.slane %v976_v14, 7  ;;  %v1022_v58 = vrot.slane %v976_v14, 5 }
 0x2df   : > { %v1267_v8 = vrot.slane %v976_v14, 3  ;;  %v1218_v4 = vrot.slane %v976_v14, 2  ;;  %v1169_v7 = vrot.slane %v976_v14, 1 }
 0x2e0   : > { %v1346_v28 = vpack.c.bf16 %v980_v44, %v976_v14  ;;  %v1072_v59 = vrot.slane %v980_v44, 6  ;;  %v1121_v9 = vrot.slane %v980_v44, 7  ;;  %v1023_v31 = vrot.slane %v980_v44, 5 }
 0x2e1   : > { %v1268_v46 = vrot.slane %v980_v44, 3  ;;  %v1219_v30 = vrot.slane %v980_v44, 2  ;;  %v1170_v45 = vrot.slane %v980_v44, 1 }
 0x2e2   : > { %1990 = vmatprep.mubr.bf16.mxu1 %v1346_v28  ;;  %v1073_v61 = vsel %vm1049_vm0, %v1071_v36, %v1072_v59  ;;  %v1122_v2 = vsel %vm1098_vm1, %v1120_v54, %v1121_v9  ;;  %v1024_v47 = vsel %vm1000_vm2, %v1022_v58, %v1023_v31 }
 0x2e3   : > { %v2692_v24 = vpack.c.bf16 %v1073_v61, %v1071_v36  ;;  %v2728_v12 = vpack.c.bf16 %v1122_v2, %v1120_v54  ;;  %v2696_v49 = vpack.c.bf16 %v1024_v47, %v1022_v58  ;;  %v1269_v39 = vsel %vm1245_vm3, %v1267_v8, %v1268_v46 }
 0x2e4   : > { %v2800_v28 = vpack.c.bf16 %v1268_v46, %v1269_v39  ;;  %v1220_v14 = vsel %vm1196_vm5, %v1218_v4, %v1219_v30  ;;  %v1171_v36 = vsel %vm1147_vm6, %v1169_v7, %v1170_v45 }
 0x2e5   : > { %2693 = vmatprep.mubr.msk.bf16.mxu0 %vm4257_vm10, %v2692_v24  ;;  %2729 = vmatmul.mubr.msk.bf16.gmra.mrb[60].mxu1 %vm4266_vm11, %v2728_v12  ;;  %v2773_v54 = vpack.c.bf16 %v1219_v30, %v1220_v14  ;;  %v2776_v58 = vpack.c.bf16 %v1170_v45, %v1171_v36 }
 0x2e6   : > { %2697 = vmatmul.mubr.msk.bf16.gmra.mrb[60].mxu0 %vm4274_vm12, %v2696_v49  ;;  %3189 = vmatprep.mubr.msk.bf16.mxu1 %vm4443_vm13, %v4282_v50  ;;  %v3446_v50 = vld [vmem:[#allocation10 + $0x10] sm:$0xff]  }
 0x2e7   : > { %2732 = vmatprep.mubr.msk.bf16.mxu0 %vm4450_vm14, %v4290_v51  ;;  %v3447_v51 = vld [vmem:[#allocation10 + $0x18] sm:$0xff]  }
 0x2ed   : > { %3190 = vmatmul.mubr.msk.bf16.vlgmr.msra.gmra.mrb[64].mxu1 %vm4443_vm13, %v4313_v10  ;;  %v3449_v10 = vld [vmem:[#allocation10 + $0x28] sm:$0xff]  }
 0x2ee   : > { %2735 = vmatmul.mubr.msk.bf16.vlgmr.msra.gmra.mrb[64].mxu0 %vm4470_vm15, %v4292_v23  ;;  %3193 = vmatprep.mubr.msk.bf16.mxu1 %vm4443_vm13, %v4337_v62  ;;  %v3448_v23 = vld [vmem:[#allocation10 + $0x20] sm:$0xff]  }
 0x2ef   : > { %2738 = vmatprep.mubr.msk.bf16.mxu0 %vm4450_vm14, %v4315_v11  ;;  %3206 = vmatpush3.bf16.msra.mxu1 %v3444_v27  ;;  %v3450_v11 = vld [vmem:[#allocation10 + $0x30] sm:$0xff]  }
 0x2f0   : > { %3207 = vmatprep.subr.bf16.mxu1 %v3445_v26 }
 0x2f3   : > { %3208 = vmatpush3.bf16.msra.mxu1 %v3445_v26 }
 0x2f4   : > { %3209 = vmatprep.subr.bf16.mxu1 %v3446_v50 }
 0x2f5   : > { %3194 = vmatmul.mubr.msk.bf16.gmra.mrb[68].mxu1 %vm4443_vm13, %v4361_v38 }
 0x2f6   : > { %2741 = vmatmul.mubr.msk.bf16.gmra.mrb[68].mxu0 %vm4470_vm15, %v4322_v32  ;;  %3197 = vmatprep.mubr.msk.bf16.mxu1 %vm4443_vm13, %v4379_v18  ;;  %v3451_v32 = vld [vmem:[#allocation10 + $0x38] sm:$0xff]  }
 0x2f7   : > { %2744 = vmatprep.mubr.msk.bf16.mxu0 %vm4450_vm14, %v4339_v63  ;;  %3210 = vmatpush3.bf16.msra.mxu1 %v3446_v50 }
 0x2f8   : > { %3211 = vmatprep.subr.bf16.mxu1 %v3447_v51 }
 0x2fb   : > { %3212 = vmatpush3.bf16.msra.mxu1 %v3447_v51 }
 0x2fc   : > { %3213 = vmatprep.subr.bf16.mxu1 %v3448_v23 }
 0x2fd   : > { %3198 = vmatmul.mubr.msk.bf16.gmra.mrb[72].mxu1 %vm4443_vm13, %v4403_v33 }
 0x2fe   : > { %2747 = vmatmul.mubr.msk.bf16.gmra.mrb[72].mxu0 %vm4470_vm15, %v4346_v5  ;;  %3201 = vmatprep.mubr.msk.bf16.mxu1 %vm4443_vm13, %v2797_v48 }
 0x2ff   : > { %2750 = vmatprep.mubr.msk.bf16.mxu0 %vm4450_vm14, %v4363_v53  ;;  %3214 = vmatpush3.bf16.msra.mxu1 %v3448_v23  ;;  %v4537_v53 = vld [vmem:[%s4767_s6] ss:$0 sm:$0xff] }
 0x300   : > { %3215 = vmatprep.subr.bf16.mxu1 %v3449_v10 }
 0x303   : > { %3216 = vmatpush3.bf16.msra.mxu1 %v3449_v10 }
 0x304   : > { %3217 = vmatprep.subr.bf16.mxu1 %v3450_v11 }
 0x305   : > { %3202 = vmatmul.mubr.msk.bf16.gmra.mrb[76].mxu1 %vm4443_vm13, %v2800_v28 }
 0x306   : > { %2753 = vmatmul.mubr.msk.bf16.gmra.mrb[76].mxu0 %vm4470_vm15, %v4370_v1 }
 0x307   : > { %2756 = vmatprep.mubr.msk.bf16.mxu0 %vm4450_vm14, %v4387_v34  ;;  %3218 = vmatpush3.bf16.msra.mxu1 %v3450_v11 }
 0x308   : > { %3219 = vmatprep.subr.bf16.mxu1 %v3451_v32 }
 0x30b   : > { %3220 = vmatpush3.bf16.msra.mxu1 %v3451_v32 }
 0x30e   : > { %2759 = vmatmul.mubr.msk.bf16.gmra.mrb[80].mxu0 %vm4470_vm15, %v4389_v40 }
 0x30f   : > { %2762 = vmatprep.mubr.msk.bf16.mxu0 %vm4450_vm14, %v4411_v43 }
 0x316   : > { %2765 = vmatmul.mubr.msk.bf16.gmra.mrb[84].mxu0 %vm4470_vm15, %v4413_v35 }
 0x317   : > { %2768 = vmatprep.mubr.msk.bf16.mxu0 %vm4450_vm14, %v2767_v41 }
 0x31e   : > { %2771 = vmatmul.mubr.msk.bf16.gmra.mrb[88].mxu0 %vm4470_vm15, %v2770_v37 }
 0x31f   : > { %2774 = vmatprep.mubr.msk.bf16.mxu0 %vm4450_vm14, %v2773_v54 }
 0x326   : > { %2777 = vmatmul.mubr.msk.bf16.gmra.mrb[92].mxu0 %vm4470_vm15, %v2776_v58 }
 0x380   : > { %v2949_v62 = vpop.f32.mrb[32].mxu1 }
 0x381   : > { %v2885_v63 = vpop.f32.mrb[32].mxu0  ;;  %v2950_v5 = vpop.f32.mrb[33].mxu1 }
 0x382   : > { %v2951_v38 = vadd.f32 %v2950_v5, %v2949_v62  ;;  %v2886_v1 = vpop.f32.mrb[33].mxu0  ;;  %v2952_v18 = vpop.f32.mrb[34].mxu1 }
 0x383   : > { %v2887_v34 = vadd.f32 %v2886_v1, %v2885_v63  ;;  %v2888_v40 = vpop.f32.mrb[34].mxu0  ;;  %v2953_v33 = vpop.f32.mrb[35].mxu1 }
 0x384   : > { %v2954_v43 = vadd.f32 %v2953_v33, %v2952_v18  ;;  %v2889_v35 = vpop.f32.mrb[35].mxu0 }
 0x385   : > { %v1840_v48 = vadd.f32 %v2887_v34, %v4537_v53  ;;  %v2890_v41 = vadd.f32 %v2889_v35, %v2888_v40 }
 0x387   : > { %v1843_v37 = vadd.f32 %v2890_v41, %v4537_v53  ;;  %v4541_v8 = vadd.f32 %v2951_v38, %v1840_v48 }
 0x388   : > { %v2955_v59 = vpop.f32.mrb[36].mxu1 }
 0x389   : > { %v2891_v9 = vpop.f32.mrb[36].mxu0  ;;  %v2956_v31 = vpop.f32.mrb[37].mxu1  ;;  %v4543_v46 = vadd.f32 %v2954_v43, %v1843_v37 }
 0x38a   : > { %v2957_v4 = vadd.f32 %v2956_v31, %v2955_v59  ;;  %v2892_v30 = vpop.f32.mrb[37].mxu0  ;;  %v2958_v45 = vpop.f32.mrb[38].mxu1 }
 0x38b   : > { %v2893_v61 = vadd.f32 %v2892_v30, %v2891_v9  ;;  %v2894_v2 = vpop.f32.mrb[38].mxu0  ;;  %v2959_v47 = vpop.f32.mrb[39].mxu1 }
 0x38c   : > { %v2960_v7 = vadd.f32 %v2959_v47, %v2958_v45  ;;  %v2895_v24 = vpop.f32.mrb[39].mxu0 }
 0x38d   : > { %v1848_v12 = vadd.f32 %v2893_v61, %v4537_v53  ;;  %v2896_v49 = vadd.f32 %v2895_v24, %v2894_v2 }
 0x38f   : > { %v1851_v20 = vadd.f32 %v2896_v49, %v4537_v53  ;;  %v4547_v39 = vadd.f32 %v2957_v4, %v1848_v12 }
 0x390   : > { %v2961_v44 = vpop.f32.mrb[40].mxu1 }
 0x391   : > { %v2897_v28 = vpop.f32.mrb[40].mxu0  ;;  %v2962_v14 = vpop.f32.mrb[41].mxu1  ;;  %v4549_v36 = vadd.f32 %v2960_v7, %v1851_v20 }
 0x392   : > { %v2963_v54 = vadd.f32 %v2962_v14, %v2961_v44  ;;  %v2898_v58 = vpop.f32.mrb[41].mxu0  ;;  %v2964_v6 = vpop.f32.mrb[42].mxu1 }
 0x393   : > { %v2899_v27 = vadd.f32 %v2898_v58, %v2897_v28  ;;  %v2900_v26 = vpop.f32.mrb[42].mxu0  ;;  %v2965_v50 = vpop.f32.mrb[43].mxu1 }
 0x394   : > { %v2966_v51 = vadd.f32 %v2965_v50, %v2964_v6  ;;  %v2901_v23 = vpop.f32.mrb[43].mxu0 }
 0x395   : > { %v1856_v10 = vadd.f32 %v2899_v27, %v4537_v53  ;;  %v2902_v11 = vadd.f32 %v2901_v23, %v2900_v26 }
 0x397   : > { %v1859_v32 = vadd.f32 %v2902_v11, %v4537_v53  ;;  %v4553_v62 = vadd.f32 %v2963_v54, %v1856_v10 }
 0x398   : > { %v2967_v63 = vpop.f32.mrb[44].mxu1 }
 0x399   : > { %v2903_v5 = vpop.f32.mrb[44].mxu0  ;;  %v2968_v38 = vpop.f32.mrb[45].mxu1  ;;  %v4555_v1 = vadd.f32 %v2966_v51, %v1859_v32 }
 0x39a   : > { %v2969_v18 = vadd.f32 %v2968_v38, %v2967_v63  ;;  %v2904_v34 = vpop.f32.mrb[45].mxu0  ;;  %v2970_v40 = vpop.f32.mrb[46].mxu1 }
 0x39b   : > { %v2905_v33 = vadd.f32 %v2904_v34, %v2903_v5  ;;  %v2906_v43 = vpop.f32.mrb[46].mxu0  ;;  %v2971_v35 = vpop.f32.mrb[47].mxu1 }
 0x39c   : > { %v2972_v48 = vadd.f32 %v2971_v35, %v2970_v40  ;;  %v2907_v41 = vpop.f32.mrb[47].mxu0 }
 0x39d   : > { %v1864_v37 = vadd.f32 %v2905_v33, %v4537_v53  ;;  %v2908_v59 = vadd.f32 %v2907_v41, %v2906_v43 }
 0x39f   : > { %v1867_v9 = vadd.f32 %v2908_v59, %v4537_v53  ;;  %v4559_v31 = vadd.f32 %v2969_v18, %v1864_v37 }
 0x3a0   : > { %v2973_v4 = vpop.f32.mrb[48].mxu1 }
 0x3a1   : > { %v2909_v30 = vpop.f32.mrb[48].mxu0  ;;  %v2974_v45 = vpop.f32.mrb[49].mxu1  ;;  %v4561_v61 = vadd.f32 %v2972_v48, %v1867_v9 }
 0x3a2   : > { %v2975_v2 = vadd.f32 %v2974_v45, %v2973_v4  ;;  %v2910_v47 = vpop.f32.mrb[49].mxu0  ;;  %v2976_v7 = vpop.f32.mrb[50].mxu1 }
 0x3a3   : > { %v2911_v24 = vadd.f32 %v2910_v47, %v2909_v30  ;;  %v2912_v12 = vpop.f32.mrb[50].mxu0  ;;  %v2977_v49 = vpop.f32.mrb[51].mxu1 }
 0x3a4   : > { %v2978_v20 = vadd.f32 %v2977_v49, %v2976_v7  ;;  %v2913_v44 = vpop.f32.mrb[51].mxu0 }
 0x3a5   : > { %v1872_v28 = vadd.f32 %v2911_v24, %v4537_v53  ;;  %v2914_v14 = vadd.f32 %v2913_v44, %v2912_v12 }
 0x3a7   : > { %v1875_v54 = vadd.f32 %v2914_v14, %v4537_v53  ;;  %v4565_v58 = vadd.f32 %v2975_v2, %v1872_v28 }
 0x3a8   : > { %v2979_v6 = vpop.f32.mrb[52].mxu1 }
 0x3a9   : > { %v2915_v27 = vpop.f32.mrb[52].mxu0  ;;  %v2980_v26 = vpop.f32.mrb[53].mxu1  ;;  %v4567_v50 = vadd.f32 %v2978_v20, %v1875_v54 }
 0x3aa   : > { %v2981_v51 = vadd.f32 %v2980_v26, %v2979_v6  ;;  %v2916_v23 = vpop.f32.mrb[53].mxu0  ;;  %v2982_v10 = vpop.f32.mrb[54].mxu1 }
 0x3ab   : > { %v2917_v11 = vadd.f32 %v2916_v23, %v2915_v27  ;;  %v2918_v32 = vpop.f32.mrb[54].mxu0  ;;  %v2983_v63 = vpop.f32.mrb[55].mxu1 }
 0x3ac   : > { %v2984_v5 = vadd.f32 %v2983_v63, %v2982_v10  ;;  %v2919_v38 = vpop.f32.mrb[55].mxu0 }
 0x3ad   : > { %v1880_v18 = vadd.f32 %v2917_v11, %v4537_v53  ;;  %v2920_v34 = vadd.f32 %v2919_v38, %v2918_v32 }
 0x3af   : > { %v1883_v40 = vadd.f32 %v2920_v34, %v4537_v53  ;;  %v4571_v33 = vadd.f32 %v2981_v51, %v1880_v18 }
 0x3b0   : > { %v2985_v43 = vpop.f32.mrb[56].mxu1 }
 0x3b1   : > { %v2921_v35 = vpop.f32.mrb[56].mxu0  ;;  %v2986_v48 = vpop.f32.mrb[57].mxu1  ;;  %v4573_v41 = vadd.f32 %v2984_v5, %v1883_v40  ;;  %v787_v5 = vsub.s32 1, %v4231_v60 }
 0x3b2   : > { %v2987_v37 = vadd.f32 %v2986_v48, %v2985_v43  ;;  %v2922_v59 = vpop.f32.mrb[57].mxu0  ;;  %v2988_v9 = vpop.f32.mrb[58].mxu1 }
 0x3b3   : > { %v2923_v4 = vadd.f32 %v2922_v59, %v2921_v35  ;;  %v2924_v30 = vpop.f32.mrb[58].mxu0  ;;  %v2989_v45 = vpop.f32.mrb[59].mxu1  ;;  %v3484_v59 = vld [vmem:[%s4766_s5] sm:$0x3] }
 0x3b4   : > { %v2990_v2 = vadd.f32 %v2989_v45, %v2988_v9  ;;  %v2925_v47 = vpop.f32.mrb[59].mxu0  ;;  %v4591_v9 = vrot.slane %v3484_v59, %v787_v5 }
 0x3b5   : > { %v1888_v7 = vadd.f32 %v2923_v4, %v4537_v53  ;;  %v2926_v24 = vadd.f32 %v2925_v47, %v2924_v30 }
 0x3b6   : > { %v908_v47 = vadd.f32 %v4240_v0, %v4591_v9 }
 0x3b7   : > { %v1891_v12 = vadd.f32 %v2926_v24, %v4537_v53  ;;  %v4577_v49 = vadd.f32 %v2987_v37, %v1888_v7 }
 0x3b8   : > { %v2991_v20 = vpop.f32.mrb[60].mxu1 }
 0x3b9   : > { %v2927_v44 = vpop.f32.mrb[60].mxu0  ;;  %v2992_v28 = vpop.f32.mrb[61].mxu1  ;;  %v4579_v14 = vadd.f32 %v2990_v2, %v1891_v12 }
 0x3ba   : > { %v2993_v54 = vadd.f32 %v2992_v28, %v2991_v20  ;;  %v2928_v6 = vpop.f32.mrb[61].mxu0  ;;  %v2994_v27 = vpop.f32.mrb[62].mxu1  ;;  %v912_v20 = vadd.f32 %v4243_v22, %v4591_v9 }
 0x3bb   : > { %v2929_v26 = vadd.f32 %v2928_v6, %v2927_v44  ;;  %v2930_v51 = vpop.f32.mrb[62].mxu0  ;;  %v2995_v23 = vpop.f32.mrb[63].mxu1 }
 0x3bc   : > { %v2996_v10 = vadd.f32 %v2995_v23, %v2994_v27  ;;  %v2931_v11 = vpop.f32.mrb[63].mxu0 }
 0x3bd   : > { %v1896_v32 = vadd.f32 %v2929_v26, %v4537_v53  ;;  %v2932_v63 = vadd.f32 %v2931_v11, %v2930_v51 }
 0x3bf   : > { %v1899_v38 = vadd.f32 %v2932_v63, %v4537_v53  ;;  %v4584_v18 = vadd.f32 %v2993_v54, %v1896_v32 }
 0x3c0   : > { %v3191_v34 = vpop.f32.mrb[64].mxu1 }
 0x3c1   : > { %v3013_v40 = vpop.f32.mrb[64].mxu0  ;;  %v2130_v43 = vpop.f32.mrb[65].mxu1  ;;  %v4586_v35 = vadd.f32 %v2996_v10, %v1899_v38 }
 0x3c2   : > { %v3014_v48 = vpop.f32.mrb[65].mxu0  ;;  %v3192_v37 = vpop.f32.mrb[66].mxu1 }
 0x3c3   : > { %v3015_v4 = vadd.f32 %v3014_v48, %v3013_v40  ;;  %v3016_v30 = vpop.f32.mrb[66].mxu0  ;;  %v2133_v60 = vpop.f32.mrb[67].mxu1  ;;  %v922_v40 = vadd.f32 %v4295_v42, %v4591_v9 }
 0x3c4   : > { %v3017_v45 = vpop.f32.mrb[67].mxu0 }
 0x3c5   : > { %v2034_v53 = vadd.f32 %v3015_v4, %v4541_v8  ;;  %v3018_v2 = vadd.f32 %v3017_v45, %v3016_v30 }
 0x3c7   : > { %v2131_v7 = vadd.f32 %v2130_v43, %v2034_v53  ;;  %v2037_v24 = vadd.f32 %v3018_v2, %v4543_v46  ;;  %v918_v46 = vadd.f32 %v4280_v19, %v4591_v9 }
 0x3c8   : > { %v3195_v12 = vpop.f32.mrb[68].mxu1 }
 0x3c9   : > { %v2134_v44 = vadd.f32 %v2133_v60, %v2037_v24  ;;  %v3019_v28 = vpop.f32.mrb[68].mxu0  ;;  %v2146_v54 = vpop.f32.mrb[69].mxu1  ;;  %v2193_v6 = vmul.f32 %v2131_v7, %v908_v47  ;;  %v928_v7 = vadd.f32 %v4304_v3, %v4591_v9 }
 0x3ca   : > { %v3020_v27 = vpop.f32.mrb[69].mxu0  ;;  %v3196_v26 = vpop.f32.mrb[70].mxu1 }
 0x3cb   : > { %v3021_v51 = vadd.f32 %v3020_v27, %v3019_v28  ;;  %v3022_v23 = vpop.f32.mrb[70].mxu0  ;;  %v2149_v8 = vpop.f32.mrb[71].mxu1  ;;  %v2194_v10 = vmul.f32 %v2134_v44, %v912_v20  ;;  %v932_v20 = vadd.f32 %v4318_v13, %v4591_v9 }
 0x3cc   : > { %v3023_v11 = vpop.f32.mrb[71].mxu0 }
 0x3cd   : > { %v2042_v0 = vadd.f32 %v3021_v51, %v4547_v39  ;;  %v3024_v32 = vadd.f32 %v3023_v11, %v3022_v23  ;;  %v2209_v63 = vpack.c.bf16 %v2194_v10, %v2193_v6 }
 0x3cf   : > { %v2139_v5 = vadd.f32 %v3191_v34, %v2042_v0  ;;  %v2045_v22 = vadd.f32 %v3024_v32, %v4549_v36  ;;  %3221 = vmatprep.mubr.bf16.mxu1 %v2209_v63  ;;  %v938_v63 = vadd.f32 %v4328_v57, %v4591_v9  ;;  %v948_v57 = vadd.f32 %v4352_v52, %v4591_v9 }
 0x3d0   : > { %v4603_v38 = vpop.f32.mrb[72].mxu1  ;;  %v958_v52 = vadd.f32 %v4377_v17, %v4591_v9 }
 0x3d1   : > { %v2195_v43 = vmul.f32 %v2139_v5, %v918_v46  ;;  %v2142_v48 = vadd.f32 %v3192_v37, %v2045_v22  ;;  %v3025_v59 = vpop.f32.mrb[72].mxu0  ;;  %v2162_v4 = vpop.f32.mrb[73].mxu1  ;;  %v942_v46 = vadd.f32 %v4342_v25, %v4591_v9  ;;  %v952_v25 = vadd.f32 %v4366_v55, %v4591_v9 }
 0x3d2   : > { %v3026_v30 = vpop.f32.mrb[73].mxu0  ;;  %v4607_v39 = vpop.f32.mrb[74].mxu1  ;;  %v962_v55 = vadd.f32 %v4392_v29, %v4591_v9  ;;  %v972_v29 = vadd.f32 %v4416_v21, %v4591_v9 }
 0x3d3   : > { %v2196_v60 = vmul.f32 %v2142_v48, %v922_v40  ;;  %v3027_v45 = vadd.f32 %v3026_v30, %v3025_v59  ;;  %v3028_v53 = vpop.f32.mrb[74].mxu0  ;;  %v2165_v19 = vpop.f32.mrb[75].mxu1 }
 0x3d4   : > { %v3029_v34 = vpop.f32.mrb[75].mxu0 }
 0x3d5   : > { %v2210_v2 = vpack.c.bf16 %v2196_v60, %v2195_v43  ;;  %v2050_v36 = vadd.f32 %v3027_v45, %v4553_v62  ;;  %v3030_v47 = vadd.f32 %v3029_v34, %v3028_v53 }
 0x3d7   : > { %v2147_v42 = vadd.f32 %v2146_v54, %v2050_v36  ;;  %v2053_v37 = vadd.f32 %v3030_v47, %v4555_v1  ;;  %3222 = vmatmul.mubr.bf16.vlgmr.msra.gmra.mrb[80].mxu1 %v2210_v2 }
 0x3d8   : > { %v4613_v24 = vpop.f32.mrb[76].mxu1 }
 0x3d9   : > { %v2150_v44 = vadd.f32 %v2149_v8, %v2053_v37  ;;  %v3031_v28 = vpop.f32.mrb[76].mxu0  ;;  %v2178_v6 = vpop.f32.mrb[77].mxu1  ;;  %v2197_v27 = vmul.f32 %v2147_v42, %v928_v7 }
 0x3da   : > { %v3032_v51 = vpop.f32.mrb[77].mxu0  ;;  %v4617_v23 = vpop.f32.mrb[78].mxu1 }
 0x3db   : > { %v3033_v62 = vadd.f32 %v3032_v51, %v3031_v28  ;;  %v3034_v10 = vpop.f32.mrb[78].mxu0  ;;  %v2181_v11 = vpop.f32.mrb[79].mxu1  ;;  %v2198_v3 = vmul.f32 %v2150_v44, %v932_v20 }
 0x3dc   : > { %v3035_v54 = vpop.f32.mrb[79].mxu0 }
 0x3dd   : > { %v2058_v1 = vadd.f32 %v3033_v62, %v4559_v31  ;;  %v3036_v0 = vadd.f32 %v3035_v54, %v3034_v10  ;;  %v2211_v32 = vpack.c.bf16 %v2198_v3, %v2197_v27 }
 0x3df   : > { %v2155_v13 = vadd.f32 %v3195_v12, %v2058_v1  ;;  %v2061_v8 = vadd.f32 %v3036_v0, %v4561_v61  ;;  %3225 = vmatprep.mubr.bf16.mxu1 %v2211_v32 }
 0x3e1   : > { %v2158_v5 = vadd.f32 %v3196_v26, %v2061_v8  ;;  %v3037_v22 = vpop.f32.mrb[80].mxu0  ;;  %v2199_v40 = vmul.f32 %v2155_v13, %v938_v63 }
 0x3e2   : > { %v3038_v43 = vpop.f32.mrb[81].mxu0 }
 0x3e3   : > { %v3039_v48 = vadd.f32 %v3038_v43, %v3037_v22  ;;  %v3040_v59 = vpop.f32.mrb[82].mxu0  ;;  %v2200_v30 = vmul.f32 %v2158_v5, %v942_v46 }
 0x3e4   : > { %v3041_v31 = vpop.f32.mrb[83].mxu0 }
 0x3e5   : > { %v2066_v60 = vadd.f32 %v3039_v48, %v4565_v58  ;;  %v3042_v45 = vadd.f32 %v3041_v31, %v3040_v59  ;;  %v2212_v53 = vpack.c.bf16 %v2200_v30, %v2199_v40 }
 0x3e7   : > { %v2163_v61 = vadd.f32 %v2162_v4, %v2066_v60  ;;  %v2069_v12 = vadd.f32 %v3042_v45, %v4567_v50  ;;  %3226 = vmatmul.mubr.bf16.gmra.mrb[84].mxu1 %v2212_v53  ;;  %v3486_v53 = vld [vmem:[%s4014_s14] sm:$0xff] }
 0x3e9   : > { %v2166_v26 = vadd.f32 %v2165_v19, %v2069_v12  ;;  %v3043_v34 = vpop.f32.mrb[84].mxu0  ;;  %v2201_v2 = vmul.f32 %v2163_v61, %v948_v57  ;;  %v3487_v12 = vld [vmem:[%s4014_s14 + $0x18] sm:$0xff] }
 0x3ea   : > { %v3044_v36 = vpop.f32.mrb[85].mxu0 }
 0x3eb   : > { %v3045_v47 = vadd.f32 %v3044_v36, %v3043_v34  ;;  %v3046_v7 = vpop.f32.mrb[86].mxu0  ;;  %v2202_v42 = vmul.f32 %v2166_v26, %v952_v25  ;;  %v3488_v26 = vld [vmem:[%s4014_s14 + $0x8] sm:$0xff] }
 0x3ec   : > { %v3047_v58 = vpop.f32.mrb[87].mxu0 }
 0x3ed   : > { %v2074_v37 = vadd.f32 %v3045_v47, %v4571_v33  ;;  %v3048_v20 = vadd.f32 %v3047_v58, %v3046_v7  ;;  %v2213_v44 = vpack.c.bf16 %v2202_v42, %v2201_v2  ;;  %v3489_v58 = vld [vmem:[%s4014_s14 + $0x30] sm:$0xff] }
 0x3ef   : > { %v2171_v50 = vadd.f32 %v4603_v38, %v2074_v37  ;;  %v2077_v4 = vadd.f32 %v3048_v20, %v4573_v41  ;;  %3229 = vmatprep.mubr.bf16.mxu1 %v2213_v44  ;;  %v968_v41 = vadd.f32 %v4401_v15, %v4591_v9  ;;  %v978_v15 = vadd.f32 %v4425_v16, %v4591_v9  ;;  %v4656_v16 = vld [vmem:[%s4768_s7] ss:$0 sm:$0xff] }
 0x3f1   : > { %v2174_v19 = vadd.f32 %v4607_v39, %v2077_v4  ;;  %v3049_v28 = vpop.f32.mrb[88].mxu0  ;;  %v2203_v27 = vmul.f32 %v2171_v50, %v958_v52  ;;  %v3490_v52 = vld [vmem:[%s4014_s14 + $0x20] sm:$0xff] }
 0x3f2   : > { %v3050_v51 = vpop.f32.mrb[89].mxu0 }
 0x3f3   : > { %v3051_v62 = vadd.f32 %v3050_v51, %v3049_v28  ;;  %v3052_v33 = vpop.f32.mrb[90].mxu0  ;;  %v2204_v10 = vmul.f32 %v2174_v19, %v962_v55  ;;  %v3491_v55 = vld [vmem:[%s4014_s14 + $0x38] sm:$0xff]  ;;  %v3492_v28 = vld [vmem:[%s4014_s14 + $0x28] sm:$0xff] }
 0x3f4   : > { %v3053_v3 = vpop.f32.mrb[91].mxu0 }
 0x3f5   : > { %v2082_v54 = vadd.f32 %v3051_v62, %v4577_v49  ;;  %v3054_v17 = vadd.f32 %v3053_v3, %v3052_v33  ;;  %v2214_v1 = vpack.c.bf16 %v2204_v10, %v2203_v27 }
 0x3f7   : > { %v2179_v38 = vadd.f32 %v2178_v6, %v2082_v54  ;;  %v2085_v0 = vadd.f32 %v3054_v17, %v4579_v14  ;;  %3230 = vmatmul.mubr.bf16.gmra.mrb[88].mxu1 %v2214_v1  ;;  %v982_v6 = vadd.f32 %v4434_v56, %v4591_v9  ;;  %v3493_v54 = vld [vmem:[%s4014_s14 + $0x50] sm:$0xff] }
 0x3f9   : > { %v2182_v39 = vadd.f32 %v2181_v11, %v2085_v0  ;;  %v3055_v32 = vpop.f32.mrb[92].mxu0  ;;  %v2205_v63 = vmul.f32 %v2179_v38, %v968_v41  ;;  %v3494_v38 = vld [vmem:[%s4014_s14 + $0x40] sm:$0xff] }
 0x3fa   : > { %v3056_v13 = vpop.f32.mrb[93].mxu0 }
 0x3fb   : > { %v3057_v8 = vadd.f32 %v3056_v13, %v3055_v32  ;;  %v3058_v46 = vpop.f32.mrb[94].mxu0  ;;  %v2206_v5 = vmul.f32 %v2182_v39, %v972_v29  ;;  %v3495_v39 = vld [vmem:[%s4014_s14 + $0x58] sm:$0xff] }
 0x3fc   : > { %v3059_v49 = vpop.f32.mrb[95].mxu0 }
 0x3fd   : > { %v2090_v22 = vadd.f32 %v3057_v8, %v4584_v18  ;;  %v3060_v40 = vadd.f32 %v3059_v49, %v3058_v46  ;;  %v2215_v43 = vpack.c.bf16 %v2206_v5, %v2205_v63  ;;  %v3496_v63 = vld [vmem:[%s4014_s14 + $0x48] sm:$0xff] }
 0x3ff   : > { %v2187_v14 = vadd.f32 %v4613_v24, %v2090_v22  ;;  %v2093_v21 = vadd.f32 %v3060_v40, %v4586_v35  ;;  %3233 = vmatprep.mubr.bf16.mxu1 %v2215_v43  ;;  %v3497_v40 = vld [vmem:[%s4014_s14 + $0x70] sm:$0xff] }
 0x401   : > { %v2190_v11 = vadd.f32 %v4617_v23, %v2093_v21  ;;  %v2207_v48 = vmul.f32 %v2187_v14, %v978_v15  ;;  %v3485_v23 = vld [vmem:[%s4014_s14 + $0x10] sm:$0xff]  ;;  %v3498_v21 = vld [vmem:[%s4014_s14 + $0x60] sm:$0xff] }
 0x403   : > { %v2208_v59 = vmul.f32 %v2190_v11, %v982_v6 }
 0x405   : > { %v2216_v18 = vpack.c.bf16 %v2208_v59, %v2207_v48  ;;  %v3499_v48 = vld [vmem:[%s4014_s14 + $0x78] sm:$0xff] }
 0x407   : > { %3234 = vmatmul.mubr.bf16.gmra.mrb[92].mxu1 %v2216_v18  ;;  %v3500_v18 = vld [vmem:[%s4014_s14 + $0x68] sm:$0xff] }
 0x4aa   : > { %v3223_v24 = vpop.f32.mrb[80].mxu1 }
 0x4ab   : > { %v2331_v35 = vadd.f32 %v3223_v24, %v4656_v16  ;;  %v2322_v30 = vpop.f32.mrb[81].mxu1 }
 0x4ac   : > { %v2323_v56 = vadd.f32 %v4656_v16, %v2322_v30  ;;  %v3224_v9 = vpop.f32.mrb[82].mxu1 }
 0x4ad   : > { %v2387_v31 = vadd.f32 %v3485_v23, %v2331_v35  ;;  %v2334_v60 = vadd.f32 %v3224_v9, %v4656_v16  ;;  %v2325_v45 = vpop.f32.mrb[83].mxu1 }
 0x4ae   : > { %v2385_v57 = vadd.f32 %v3486_v53, %v2323_v56  ;;  %v2326_v61 = vadd.f32 %v4656_v16, %v2325_v45 }
 0x4af   : > { %2403 = vst [vmem:[%s4666_s18 + $0x10] sm:$0xff] %v2387_v31  ;;  %v2388_v25 = vadd.f32 %v3487_v12, %v2334_v60 }
 0x4b0   : > { %2401 = vst [vmem:[%s4666_s18] sm:$0xff] %v2385_v57  ;;  %v2386_v34 = vadd.f32 %v3488_v26, %v2326_v61 }
 0x4b1   : > { %2404 = vst [vmem:[%s4666_s18 + $0x18] sm:$0xff] %v2388_v25 }
 0x4b2   : > { %2402 = vst [vmem:[%s4666_s18 + $0x8] sm:$0xff] %v2386_v34 }
 0x4ba   : > { %v3227_v2 = vpop.f32.mrb[84].mxu1 }
 0x4bb   : > { %v2347_v36 = vadd.f32 %v3227_v2, %v4656_v16  ;;  %v2338_v47 = vpop.f32.mrb[85].mxu1 }
 0x4bc   : > { %v2339_v7 = vadd.f32 %v4656_v16, %v2338_v47  ;;  %v3228_v42 = vpop.f32.mrb[86].mxu1 }
 0x4bd   : > { %v2391_v37 = vadd.f32 %v3489_v58, %v2347_v36  ;;  %v2350_v20 = vadd.f32 %v3228_v42, %v4656_v16  ;;  %v2341_v44 = vpop.f32.mrb[87].mxu1 }
 0x4be   : > { %v2389_v50 = vadd.f32 %v3490_v52, %v2339_v7  ;;  %v2342_v4 = vadd.f32 %v4656_v16, %v2341_v44 }
 0x4bf   : > { %2407 = vst [vmem:[%s4666_s18 + $0x30] sm:$0xff] %v2391_v37  ;;  %v2392_v19 = vadd.f32 %v3491_v55, %v2350_v20 }
 0x4c0   : > { %2405 = vst [vmem:[%s4666_s18 + $0x20] sm:$0xff] %v2389_v50  ;;  %v2390_v27 = vadd.f32 %v3492_v28, %v2342_v4 }
 0x4c1   : > { %2408 = vst [vmem:[%s4666_s18 + $0x38] sm:$0xff] %v2392_v19 }
 0x4c2   : > { %2406 = vst [vmem:[%s4666_s18 + $0x28] sm:$0xff] %v2390_v27 }
 0x4ca   : > { %v3231_v51 = vpop.f32.mrb[88].mxu1 }
 0x4cb   : > { %v2363_v62 = vadd.f32 %v3231_v51, %v4656_v16  ;;  %v2354_v33 = vpop.f32.mrb[89].mxu1 }
 0x4cc   : > { %v2355_v10 = vadd.f32 %v4656_v16, %v2354_v33  ;;  %v3232_v3 = vpop.f32.mrb[90].mxu1 }
 0x4cd   : > { %v2395_v17 = vadd.f32 %v3493_v54, %v2363_v62  ;;  %v2366_v1 = vadd.f32 %v3232_v3, %v4656_v16  ;;  %v2357_v41 = vpop.f32.mrb[91].mxu1 }
 0x4ce   : > { %v2393_v0 = vadd.f32 %v3494_v38, %v2355_v10  ;;  %v2358_v29 = vadd.f32 %v4656_v16, %v2357_v41 }
 0x4cf   : > { %2411 = vst [vmem:[%s4666_s18 + $0x50] sm:$0xff] %v2395_v17  ;;  %v2396_v32 = vadd.f32 %v3495_v39, %v2366_v1 }
 0x4d0   : > { %2409 = vst [vmem:[%s4666_s18 + $0x40] sm:$0xff] %v2393_v0  ;;  %v2394_v13 = vadd.f32 %v3496_v63, %v2358_v29 }
 0x4d1   : > { %2412 = vst [vmem:[%s4666_s18 + $0x58] sm:$0xff] %v2396_v32 }
 0x4d2   : > { %2410 = vst [vmem:[%s4666_s18 + $0x48] sm:$0xff] %v2394_v13 }
 0x4da   : > { %v3235_v8 = vpop.f32.mrb[92].mxu1 }
 0x4db   : > { %v2379_v46 = vadd.f32 %v3235_v8, %v4656_v16  ;;  %v2370_v5 = vpop.f32.mrb[93].mxu1 }
 0x4dc   : > { %v2371_v49 = vadd.f32 %v4656_v16, %v2370_v5  ;;  %v3236_v22 = vpop.f32.mrb[94].mxu1 }
 0x4dd   : > { %v2399_v43 = vadd.f32 %v3497_v40, %v2379_v46  ;;  %v2382_v15 = vadd.f32 %v3236_v22, %v4656_v16  ;;  %v2373_v14 = vpop.f32.mrb[95].mxu1 }
 0x4de   : > { %v2397_v6 = vadd.f32 %v3498_v21, %v2371_v49  ;;  %v2374_v11 = vadd.f32 %v4656_v16, %v2373_v14 }
 0x4df   : > { %2415 = vst [vmem:[%s4666_s18 + $0x70] sm:$0xff] %v2399_v43  ;;  %v2400_v59 = vadd.f32 %v3499_v48, %v2382_v15 }
 0x4e0   : > { %2413 = vst [vmem:[%s4666_s18 + $0x60] sm:$0xff] %v2397_v6  ;;  %v2398_v24 = vadd.f32 %v3500_v18, %v2374_v11 }
 0x4e1   : > { %2416 = vst [vmem:[%s4666_s18 + $0x78] sm:$0xff] %v2400_v59 }
 0x4e2   : > { %2414 = vst [vmem:[%s4666_s18 + $0x68] sm:$0xff] %v2398_v24 }
 0x4e3   : > { %3656 = shalt.err (!%p3653_p13)
}
 0x4e4   : > { %s3657_s14 = scalar_lea.hbm %s4711_s9, 2048  ;;  %s3661_s20 = scalar_lea.hbm %s4769_s8, 4096 }
 0x4e5   : > { %p3658_p9 = scmp.ne.s32.totalorder %s4711_s9, %s3657_s14  ;;  %p3662_p6 = scmp.lt.u32.totalorder %s4711_s9, %s4769_s8 }
 0x4e6   : > { %p3663_p4 = scmp.lt.u32.totalorder %s3661_s20, %s3657_s14  ;;  %p3665_p10 = scmp.lt.u32.totalorder %s3657_s14, %s4711_s9 }
 0x4e7   : > { %p3659_p0 = pnand %p3658_p9, %p3956_p3 }
 0x4e8   : > { %p3664_p8 = por %p3663_p4, %p3662_p6 }
 0x4e9   : > { %p3660_p11 = pneg %p3659_p0 }
 0x4ea   : > { %p3666_p5 = por %p3665_p10, %p3664_p8 }
 0x4ec   : > { %p3667_p7 = pnand %p3666_p5, %p3660_p11 }
 0x4ee   : > { %3670 = shalt.err (!%p3667_p7)
}
 0x4ef   : > { %s3731_s26 = smov 128   ;;  %s3732_s19 = smov 8  }
 0x4f0   : > { %3287 = dma.vmem_to_hbm [thread:$0]  (%p3956_p3), %s4713_s21, 2048, %s4711_s9, %s2418_s11, %s3731_s26, %s3731_s26, %s3732_s19  }
 0x4f1 PF: > { %s4815_s13 = sld [smem:[#allocation16_spill]]  ;;  %s2447_s1 = sand.u32 1, %s3705_s27  }
 0x4f2   : > { %p4817_p1 = scmp.ge.s32.totalorder %s3717_s30, 2  ;;  %s2448_s17 = scalar_lea.sflag [#allocation4], %s2447_s1 }
 0x4f7   : > { %p4816_p12 = scmp.ne.s32.totalorder %s4815_s13, 0 }
 0x4f9   : > { %p3307_p2 = pnand %p4817_p1, %p4816_p12 }
 0x4fb   : > { %3700 = dma.done.wait (!%p3307_p2), %s2448_s17, 2048  }
 0x4fc   : > { %3702 = vsyncadd (!%p3307_p2), %s2448_s17, 4294965248  ;;  %p23_p13 = scmp.ge.s32.totalorder %s3943_s16, 4   ;;  %s4818_s27 = smov %s3709_s28 }
 0x4fd   : > { %s4819_s28 = smov %s3713_s29  ;;  %s4820_s29 = smov %s3952_s10 }
 0x4fe   : > { %s4821_s30 = smov %s3943_s16  ;;  %25 = sbr.rel (!%p23_p13) target bundleno = 9 (0x9), region = 113 }
 0x505   :  { %2453 = vsyncpa [#allocation3], 1 }
 0x506   :  { %2455 = vsyncpa [#allocation3 + $0x1], 1 }
 0x507   :  { %2456 = vsyncpa [#allocation6], 1 }
 0x508   :  { %2457 = vsyncpa [#allocation9], 1 }
 0x509   :  { %2458 = vsyncpa [#allocation4], 1 }
 0x50a   :  { %2460 = vsyncpa [#allocation4 + $0x1], 1 }

</bundles_post_ra>
